<compile_context>
chip_gen: v7x
topology: tpu7x:2x2x1
jax: 0.10.0
libtpu: 0.0.40
codegen_flags: <defaults>
</compile_context>

<pallas_src>
import jax
import jax.numpy as jnp
from jax.experimental import pallas as pl
from jax.experimental.pallas import tpu as pltpu


def _round_up(v, m):
    return ((v + m - 1) // m) * m


def _cdiv(a, b):
    return -(-a // b)


def _pad_to(arr, shape):
    pads = [(0, t - s) for s, t in zip(arr.shape, shape)]
    if all(p == (0, 0) for p in pads):
        return arr
    return jnp.pad(arr, pads)


def _supports_pipeline_mode():
    try:
        pl.BlockSpec((8, 128), lambda i: (0, 0), pipeline_mode=pl.Buffered(1))
        return True
    except (TypeError, AttributeError):
        return False


_HAS_PIPELINE_MODE = _supports_pipeline_mode()


def _resident_spec(shape):
    """BlockSpec for an operand kept resident in VMEM for the whole grid.

    Constant index_map -> fetched once; pipeline_mode=pl.Buffered(1) -> single VMEM
    buffer (the default pipeline still allocates 2 buffers per input even for constant
    index_maps), which halves resident weight VMEM.
    """
    index_map = lambda i: (0,) * len(shape)
    if _HAS_PIPELINE_MODE:
        return pl.BlockSpec(shape, index_map, pipeline_mode=pl.Buffered(1))
    return pl.BlockSpec(shape, index_map)  # older jax: default double buffering


def _tpu_topology():
    """(vmem_capacity_bytes, two_tensorcores) with conservative fallbacks."""
    vmem_capacity = 64 * 1024 * 1024  # v7x per-TC VMEM = smallest in the fleet
    try:
        vmem_capacity = int(pltpu.get_tpu_info().vmem_capacity_bytes)
    except Exception:  # best-effort query
        pass
    two_tc = False
    try:
        kind = jax.devices()[0].device_kind.lower()
        # v7x has 2 TensorCores/chip; v3/v4 megacore also wants >= 2 even batch tiles.
        two_tc = any(tag in kind for tag in ("v7", "v4", "v3"))
    except Exception:
        pass
    return vmem_capacity, two_tc


def _make_mlp_kernel(num_layers, use_ac_func, quantized, compute_dtype):
    """Fused MLP kernel. refs = (x_tile, [w_i, b_i(, scale_i)] * L, out_tile)."""
    per_layer = 3 if quantized else 2

    def kernel(*refs):
        x_ref = refs[0]
        out_ref = refs[-1]
        h = x_ref[...].astype(jnp.float32)
        for i in range(num_layers):
            base = 1 + per_layer * i
            w = refs[base][...]
            b = refs[base + 1][...].astype(jnp.float32)        # (1, D_out) broadcasts over rows
            if quantized:
                s = refs[base + 2][...]                         # (1, D_out) per-out-channel scale
                # int8 values are exact in bf16; fold the dequant scale into the bias-add
                # epilogue so the MXU sees a plain bf16 x bf16 matmul with f32 accumulation.
                acc = jnp.dot(h.astype(compute_dtype), w.astype(compute_dtype),
                              preferred_element_type=jnp.float32)
                h = acc * s + b
            else:
                # f32 path exact; bf16 path = bf16 weights + activations, f32 accumulation.
                h = jnp.dot(h.astype(w.dtype), w,
                            preferred_element_type=jnp.float32) + b
            if i < len(use_ac_func) and use_ac_func[i]:
                h = jnp.maximum(h, 0.0)                         # nn.ReLU
            # nn.Dropout: identity in eval/inference mode.
            # TODO(synk): training-mode dropout would use pltpu.prng_seed +
            # pltpu.stateful_bernoulli; omitted to match eval semantics.
        out_ref[...] = h.astype(out_ref.dtype)

    return kernel


def linear_model_forward(x, weights, biases, use_ac_func, use_dropout,
                         *, block_m=512, weight_dtype=jnp.bfloat16):
    """Forward of LinearModel.fc_blocks as one fused batch-tiled Pallas kernel (eval mode).

    x:       (B, fc_layers[0]) float32
    weights: list of (D_in, D_out) float32 (transposed from torch's (out, in))
    biases:  list of (D_out,) float32
    weight_dtype:
      jnp.float32  : exact reference numerics.
      jnp.bfloat16 : DEFAULT. bf16 weights + activations, f32 MXU accumulation; halves
                     weight HBM traffic / resident VMEM (the real [2133,1024,1024,85]
                     config is weight-DMA-bound at small inference batch).
      jnp.int8     : per-output-channel symmetric int8 weights, scale folded into the
                     bias epilogue; halves weight bytes again (best on v5e/v6e).
      TODO(synk): fp8 (e4m3) weight path for v7x (its MXU has no integer path).
    """
    num_layers = len(weights)
    B = x.shape[0]
    dims = [x.shape[1]] + [w.shape[1] for w in weights]
    for i, w in enumerate(weights):
        assert w.shape == (dims[i], dims[i + 1]), "weight shape mismatch"
    out_dim = dims[-1]

    weight_dtype = jnp.dtype(weight_dtype)
    quantized = weight_dtype == jnp.dtype(jnp.int8)

    # Lane padding: feature dims -> multiples of 128 (zero padding is exact: padded input
    # cols hit zero weight rows; padded output cols get zero bias/scale and stay zero
    # through ReLU).
    pdims = [_round_up(d, 128) for d in dims]

    vmem_capacity, two_tc = _tpu_topology()

    # ---- batch tiling: right-size the tile to B (avoid padding waste); on 2-TC chips
    # force >= 2 and an even number of tiles so the "parallel" axis uses both cores. ----
    B8 = _round_up(max(B, 1), 8)
    n_tiles = max(1, _cdiv(B8, max(8, int(block_m))))
    if two_tc and B8 > 8:
        n_tiles = max(n_tiles, 2)
        if n_tiles % 2:
            n_tiles += 1
    block_m_eff = _round_up(_cdiv(B8, n_tiles), 8)

    # ---- VMEM budget: count buffer multiplicity (weights single-buffered when
    # pipeline_mode is available, else 2x), double-buffered x/out tiles, and f32
    # intermediates / compiler temporaries. ----
    weight_buf_factor = 1 if _HAS_PIPELINE_MODE else 2
    w_bytes = sum(pdims[i] * pdims[i + 1] for i in range(num_layers)) * weight_dtype.itemsize
    aux_bytes = sum(pdims[1:]) * 4 * (2 if quantized else 1)   # biases (+ scales), f32
    act_itemsize = jnp.dtype(x.dtype).itemsize

    def est_vmem(bm):
        x_tile = bm * pdims[0] * act_itemsize
        out_tile = bm * pdims[-1] * act_itemsize
        inter = bm * max(pdims) * 4                # f32 h at the widest layer
        return (weight_buf_factor * (w_bytes + aux_bytes)
                + 2 * (x_tile + out_tile)          # double-buffered streamed tiles
                + 3 * inter)                       # h + cast lhs + Mosaic matmul temporaries

    budget = int(0.55 * vmem_capacity)
    while block_m_eff > 64 and est_vmem(block_m_eff) > budget:
        block_m_eff = _round_up(block_m_eff // 2, 8)

    b_pad = _round_up(B8, block_m_eff)
    grid = (b_pad // block_m_eff,)
    est_bytes = est_vmem(block_m_eff)

    # Raise the scoped-VMEM limit above the per-gen defaults (16 MiB v5e / 32 MiB v6e,v7x)
    # but cap at 75% of physical VMEM (v7x has only 64 MiB/TC).
    vmem_limit = min(max(int(est_bytes * 1.3), 32 * 1024 * 1024),
                     int(0.75 * vmem_capacity))
    compiler_params = pltpu.CompilerParams(
        dimension_semantics=("parallel",),         # megacore-shard the batch axis
        vmem_limit_bytes=vmem_limit,
    )

    # ---- operands & specs ----
    x_p = _pad_to(x, (b_pad, pdims[0]))
    in_specs = [pl.BlockSpec((block_m_eff, pdims[0]), lambda i: (i, 0))]
    layer_args = []
    for li in range(num_layers):
        wp = _pad_to(weights[li], (pdims[li], pdims[li + 1])).astype(jnp.float32)
        bp = _pad_to(biases[li].reshape(1, -1), (1, pdims[li + 1])).astype(jnp.float32)
        if quantized:
            amax = jnp.max(jnp.abs(wp), axis=0, keepdims=True)
            scale = jnp.maximum(amax, 1e-8) / 127.0                 # (1, D_out) f32
            wq = jnp.clip(jnp.round(wp / scale), -127.0, 127.0).astype(jnp.int8)
            layer_args += [wq, bp, scale]
            in_specs += [_resident_spec(wq.shape), _resident_spec(bp.shape),
                         _resident_spec(scale.shape)]
        else:
            wp = wp.astype(weight_dtype)
            layer_args += [wp, bp]
            in_specs += [_resident_spec(wp.shape), _resident_spec(bp.shape)]

    out_specs = pl.BlockSpec((block_m_eff, pdims[-1]), lambda i: (i, 0))
    out_shape = jax.ShapeDtypeStruct((b_pad, pdims[-1]), x.dtype)

    flops = 2 * b_pad * sum(pdims[i] * pdims[i + 1] for i in range(num_layers))
    bytes_accessed = (x_p.size * x_p.dtype.itemsize
                      + b_pad * pdims[-1] * act_itemsize
                      + sum(int(a.size) * a.dtype.itemsize for a in layer_args))
    cost = pl.CostEstimate(flops=flops, transcendentals=0, bytes_accessed=bytes_accessed)

    kernel = _make_mlp_kernel(num_layers, tuple(use_ac_func), quantized, jnp.bfloat16)

    out_padded = pl.pallas_call(
        kernel,
        out_shape=out_shape,
        grid=grid,
        in_specs=in_specs,
        out_specs=out_specs,
        compiler_params=compiler_params,
        cost_estimate=cost,
    )(x_p, *layer_args)
    return out_padded[:B, :out_dim]


def _init_params(key, fc_layers):
    """Deterministic init mimicking nn.Linear default (uniform +/- 1/sqrt(fan_in))."""
    weights, biases = [], []
    for i in range(len(fc_layers) - 1):
        d_in, d_out = fc_layers[i], fc_layers[i + 1]
        key, kw, kb = jax.random.split(key, 3)
        bound = 1.0 / (d_in ** 0.5)
        # torch stores (out, in); we store transposed (in, out) for the kernel.
        weights.append(jax.random.uniform(kw, (d_in, d_out), jnp.float32, -bound, bound))
        biases.append(jax.random.uniform(kb, (d_out,), jnp.float32, -bound, bound))
    return weights, biases


def _reference_forward(x, weights, biases, use_ac_func, use_dropout):
    h = x
    for i, (w, b) in enumerate(zip(weights, biases)):
        h = h @ w + b
        if i < len(use_ac_func) and use_ac_func[i]:
            h = jnp.maximum(h, 0.0)
        # dropout is identity in eval mode
    return h


if __name__ == "__main__":
    # Small-shape analogue of the docstring config [2133, 1024, 1024, 85]:
    # feature dims deliberately NOT multiples of 128 (exercises lane padding),
    # batch deliberately not a multiple of the target tile (exercises right-sizing).
    fc_layers = [160, 192, 192, 96]
    use_dropout = [True, True, False]
    drop_prob = [0.5, 0.5, 0.0]
    use_ac_func = [True, True, False]

    key = jax.random.PRNGKey(0)
    key, kx = jax.random.split(key)
    batch = 300
    x = jax.random.normal(kx, (batch, fc_layers[0]), jnp.float32)

    weights, biases = _init_params(key, fc_layers)
    ref = _reference_forward(x, weights, biases, use_ac_func, use_dropout)
    ref_max = float(jnp.max(jnp.abs(ref)))

    # 1) f32 weights: exact path.
    out_f32 = jax.block_until_ready(
        linear_model_forward(x, weights, biases, use_ac_func, use_dropout,
                             weight_dtype=jnp.float32))
    assert out_f32.shape == (batch, fc_layers[-1])
    assert jnp.allclose(out_f32, ref, atol=1e-4, rtol=1e-4), "f32 mismatch vs reference"

    # 2) Default path: bf16 weights + activations, f32 accumulation.
    out_bf16 = jax.block_until_ready(
        linear_model_forward(x, weights, biases, use_ac_func, use_dropout))
    assert out_bf16.shape == (batch, fc_layers[-1])
    assert jnp.allclose(out_bf16, ref, atol=1e-1, rtol=1e-1), "bf16 mismatch vs reference"

    # 3) int8 weights (per-output-channel scales) for weight-DMA-bound v5e/v6e serving.
    out_i8 = jax.block_until_ready(
        linear_model_forward(x, weights, biases, use_ac_func, use_dropout,
                             weight_dtype=jnp.int8))
    assert out_i8.shape == (batch, fc_layers[-1])
    err = float(jnp.max(jnp.abs(out_i8 - ref)))
    assert err <= 0.15 * ref_max + 1e-3, f"int8 mismatch vs reference (max err {err})"

    print("KERNEL_OK")
</pallas_src>

<mosaic_0001>
module attributes {stable_mosaic.version = 11 : i64} {
  func.func @kernel(%arg0: i32, %arg1: memref<304x256xf32, #tpu.memory_space<vmem>>, %arg2: memref<256x256xf32, #tpu.memory_space<vmem>>, %arg3: memref<1x256xf32, #tpu.memory_space<vmem>>, %arg4: memref<256x256xf32, #tpu.memory_space<vmem>>, %arg5: memref<1x256xf32, #tpu.memory_space<vmem>>, %arg6: memref<256x128xf32, #tpu.memory_space<vmem>>, %arg7: memref<1x128xf32, #tpu.memory_space<vmem>>, %arg8: memref<304x128xf32, #tpu.memory_space<vmem>>) attributes {dimension_semantics = [#tpu.dimension_semantics<parallel>], iteration_bounds = array<i64: 1>, scalar_prefetch = 0 : i64, scratch_operands = 0 : i64, tpu.core_type = #tpu.core_type<tc>, window_params = [{transform_indices = @transform_0, window_bounds = array<i64: 304, 256>}, {pipeline_mode = #tpu.pipeline_mode<synchronous>, transform_indices = @transform_1, window_bounds = array<i64: 256, 256>}, {pipeline_mode = #tpu.pipeline_mode<synchronous>, transform_indices = @transform_2, window_bounds = array<i64: 1, 256>}, {pipeline_mode = #tpu.pipeline_mode<synchronous>, transform_indices = @transform_3, window_bounds = array<i64: 256, 256>}, {pipeline_mode = #tpu.pipeline_mode<synchronous>, transform_indices = @transform_4, window_bounds = array<i64: 1, 256>}, {pipeline_mode = #tpu.pipeline_mode<synchronous>, transform_indices = @transform_5, window_bounds = array<i64: 256, 128>}, {pipeline_mode = #tpu.pipeline_mode<synchronous>, transform_indices = @transform_6, window_bounds = array<i64: 1, 128>}, {transform_indices = @transform_7, window_bounds = array<i64: 304, 128>}]} {
    %c0 = arith.constant 0 : index
    %c0_0 = arith.constant 0 : index
    %0 = vector.load %arg1[%c0, %c0_0] : memref<304x256xf32, #tpu.memory_space<vmem>>, vector<304x256xf32>
    %c0_1 = arith.constant 0 : index
    %c0_2 = arith.constant 0 : index
    %1 = vector.load %arg2[%c0_1, %c0_2] : memref<256x256xf32, #tpu.memory_space<vmem>>, vector<256x256xf32>
    %c0_3 = arith.constant 0 : index
    %c0_4 = arith.constant 0 : index
    %2 = vector.load %arg3[%c0_3, %c0_4] : memref<1x256xf32, #tpu.memory_space<vmem>>, vector<1x256xf32>
    %cst = arith.constant dense<0.000000e+00> : vector<304x256xf32>
    %3 = tpu.matmul %0, %1, %cst {dimension_numbers = #tpu.dot_dimension_numbers<[1], [0], [0], [1], [0, 0, 1, 1], [], []>} : vector<304x256xf32>, vector<256x256xf32>, vector<304x256xf32> -> vector<304x256xf32>
    %4 = vector.broadcast %2 : vector<1x256xf32> to vector<304x256xf32>
    %5 = arith.addf %3, %4 : vector<304x256xf32>
    %cst_5 = arith.constant 0.000000e+00 : f32
    %6 = vector.broadcast %cst_5 : f32 to vector<304x256xf32>
    %7 = arith.maximumf %5, %6 : vector<304x256xf32>
    %c0_6 = arith.constant 0 : index
    %c0_7 = arith.constant 0 : index
    %8 = vector.load %arg4[%c0_6, %c0_7] : memref<256x256xf32, #tpu.memory_space<vmem>>, vector<256x256xf32>
    %c0_8 = arith.constant 0 : index
    %c0_9 = arith.constant 0 : index
    %9 = vector.load %arg5[%c0_8, %c0_9] : memref<1x256xf32, #tpu.memory_space<vmem>>, vector<1x256xf32>
    %cst_10 = arith.constant dense<0.000000e+00> : vector<304x256xf32>
    %10 = tpu.matmul %7, %8, %cst_10 {dimension_numbers = #tpu.dot_dimension_numbers<[1], [0], [0], [1], [0, 0, 1, 1], [], []>} : vector<304x256xf32>, vector<256x256xf32>, vector<304x256xf32> -> vector<304x256xf32>
    %11 = vector.broadcast %9 : vector<1x256xf32> to vector<304x256xf32>
    %12 = arith.addf %10, %11 : vector<304x256xf32>
    %cst_11 = arith.constant 0.000000e+00 : f32
    %13 = vector.broadcast %cst_11 : f32 to vector<304x256xf32>
    %14 = arith.maximumf %12, %13 : vector<304x256xf32>
    %c0_12 = arith.constant 0 : index
    %c0_13 = arith.constant 0 : index
    %15 = vector.load %arg6[%c0_12, %c0_13] : memref<256x128xf32, #tpu.memory_space<vmem>>, vector<256x128xf32>
    %c0_14 = arith.constant 0 : index
    %c0_15 = arith.constant 0 : index
    %16 = vector.load %arg7[%c0_14, %c0_15] : memref<1x128xf32, #tpu.memory_space<vmem>>, vector<1x128xf32>
    %cst_16 = arith.constant dense<0.000000e+00> : vector<304x128xf32>
    %17 = tpu.matmul %14, %15, %cst_16 {dimension_numbers = #tpu.dot_dimension_numbers<[1], [0], [0], [1], [0, 0, 1, 1], [], []>} : vector<304x256xf32>, vector<256x128xf32>, vector<304x128xf32> -> vector<304x128xf32>
    %18 = vector.broadcast %16 : vector<1x128xf32> to vector<304x128xf32>
    %19 = arith.addf %17, %18 : vector<304x128xf32>
    %c0_17 = arith.constant 0 : index
    %c0_18 = arith.constant 0 : index
    %20 = vector.load %arg8[%c0_17, %c0_18] : memref<304x128xf32, #tpu.memory_space<vmem>>, vector<304x128xf32>
    tpu.vector_store %arg8[%c0_17, %c0_18], %19 {strides = array<i32>} : memref<304x128xf32, #tpu.memory_space<vmem>>, vector<304x128xf32>,
    return
  }
  func.func @transform_0(%arg0: i32) -> (i32, i32) {
    %c0_i32 = arith.constant 0 : i32
    %c0_i32_0 = arith.constant 0 : i32
    return %arg0, %c0_i32 : i32, i32
  }
  func.func @transform_1(%arg0: i32) -> (i32, i32) {
    %c0_i32 = arith.constant 0 : i32
    %c0_i32_0 = arith.constant 0 : i32
    %c0_i32_1 = arith.constant 0 : i32
    return %c0_i32, %c0_i32_0 : i32, i32
  }
  func.func @transform_2(%arg0: i32) -> (i32, i32) {
    %c0_i32 = arith.constant 0 : i32
    %c0_i32_0 = arith.constant 0 : i32
    %c0_i32_1 = arith.constant 0 : i32
    return %c0_i32, %c0_i32_0 : i32, i32
  }
  func.func @transform_3(%arg0: i32) -> (i32, i32) {
    %c0_i32 = arith.constant 0 : i32
    %c0_i32_0 = arith.constant 0 : i32
    %c0_i32_1 = arith.constant 0 : i32
    return %c0_i32, %c0_i32_0 : i32, i32
  }
  func.func @transform_4(%arg0: i32) -> (i32, i32) {
    %c0_i32 = arith.constant 0 : i32
    %c0_i32_0 = arith.constant 0 : i32
    %c0_i32_1 = arith.constant 0 : i32
    return %c0_i32, %c0_i32_0 : i32, i32
  }
  func.func @transform_5(%arg0: i32) -> (i32, i32) {
    %c0_i32 = arith.constant 0 : i32
    %c0_i32_0 = arith.constant 0 : i32
    %c0_i32_1 = arith.constant 0 : i32
    return %c0_i32, %c0_i32_0 : i32, i32
  }
  func.func @transform_6(%arg0: i32) -> (i32, i32) {
    %c0_i32 = arith.constant 0 : i32
    %c0_i32_0 = arith.constant 0 : i32
    %c0_i32_1 = arith.constant 0 : i32
    return %c0_i32, %c0_i32_0 : i32, i32
  }
  func.func @transform_7(%arg0: i32) -> (i32, i32) {
    %c0_i32 = arith.constant 0 : i32
    %c0_i32_0 = arith.constant 0 : i32
    return %arg0, %c0_i32 : i32, i32
  }
}

</mosaic_0001>

<bundles_post_ra>
// kernel: tpu_custom_call.1
= control target key start
LH: loop header
LB: loop body
LE: loop exit
PB: predicated region body
PF: predicated region fallthrough
CT: control target
= control target key end

     0   :  { %12 = vsyncpa [#allocation3], 0  ;;  %s2226_s0 = inlined_call_operand.hbm [shape: f32[304,256], index: 0, kind: input, shape index: {}]   ;;  %s2227_s1 = inlined_call_operand.hbm [shape: f32[256,256], index: 1, kind: input, shape index: {}]   ;;  %s2228_s2 = inlined_call_operand.vmem [shape: f32[1,256], index: 2, kind: input, shape index: {}]   ;;  %s2229_s3 = inlined_call_operand.hbm [shape: f32[256,256], index: 3, kind: input, shape index: {}]   ;;  %s2230_s4 = inlined_call_operand.vmem [shape: f32[1,256], index: 4, kind: input, shape index: {}]   ;;  %s2231_s5 = inlined_call_operand.hbm [shape: f32[256,128], index: 5, kind: input, shape index: {}]   ;;  %s2232_s6 = inlined_call_operand.vmem [shape: f32[1,128], index: 6, kind: input, shape index: {}]   ;;  %s2233_s7 = inlined_call_operand.hbm [shape: f32[304,128], index: 7, kind: output, shape index: {}]  }
   0x1   :  { %13 = vsyncpa [#allocation6], 0 }
   0x2   :  { %14 = vsyncpa [#allocation9], 0 }
   0x3   :  { %15 = vsyncpa [#allocation4], 0  ;;  %s1736_s24 = smov [#allocation5]   ;;  %s1737_s26 = smov [#allocation2]  }
   0x4   :  { %s33_s25 = sshll.u32 %s1736_s24, 4  ;;  %s21_s27 = sshll.u32 %s1737_s26, 4  ;;  %s34_s25 = int_to_ptr.vmem [resolvable:$true] %s33_s25  ;;  %s1786_s27 = int_to_ptr.vmem [resolvable:$true] %s21_s27 }
   0x5   :  { %s1618_s30 = scalar_lea.hbm %s2227_s1, 8192 }
   0x6   :  { %p1619_p0 = scmp.ne.s32.totalorder %s2227_s1, %s1618_s30  ;;  %p1622_p1 = scmp.lt.u32.totalorder %s1618_s30, %s2227_s1 }
   0x8   :  { %p1624_p2 = pnand %p1622_p1, %p1619_p0 }
   0xa   :  { %1627 = shalt.err (!%p1624_p2)
}
   0xb   :  { %s1628_s12 = scalar_lea.vmem %s34_s25, 8192  ;;  %p1633_p4 = scmp.lt.s32.totalorder %s34_s25, %s34_s25 }
   0xc   :  { %p1629_p3 = scmp.ne.s32.totalorder %s34_s25, %s1628_s12  ;;  %p1634_p5 = scmp.lt.s32.totalorder %s1628_s12, %s1628_s12 }
   0xe   :  { %p1635_p6 = por %p1634_p5, %p1633_p4 }
  0x10   :  { %p1636_p7 = pnand %p1635_p6, %p1629_p3 }
  0x12   :  { %1639 = shalt.err (!%p1636_p7)
}
  0x13   :  { %s1738_s13 = smov 256   ;;  %s1739_s14 = smov 16  }
  0x14   :  { %39 = dma.hbm_to_vmem [thread:$0]  %s2227_s1, 8192, %s34_s25, [#allocation6], %s1738_s13, %s1738_s13, %s1739_s14  }
  0x15   :  { %s1640_s19 = scalar_lea.hbm %s2226_s0, 9728 }
  0x16   :  { %p1641_p8 = scmp.ne.s32.totalorder %s2226_s0, %s1640_s19  ;;  %p1644_p9 = scmp.lt.u32.totalorder %s1640_s19, %s2226_s0 }
  0x18   :  { %p1646_p10 = pnand %p1644_p9, %p1641_p8 }
  0x1a   :  { %1649 = shalt.err (!%p1646_p10)
}
  0x1b   :  { %s1650_s24 = scalar_lea.vmem %s1786_s27, 9728  ;;  %p1655_p12 = scmp.lt.s32.totalorder %s1786_s27, %s1786_s27 }
  0x1c   :  { %p1651_p11 = scmp.ne.s32.totalorder %s1786_s27, %s1650_s24  ;;  %p1656_p13 = scmp.lt.s32.totalorder %s1650_s24, %s1650_s24 }
  0x1e   :  { %p1657_p0 = por %p1656_p13, %p1655_p12 }
  0x20   :  { %p1658_p1 = pnand %p1657_p0, %p1651_p11 }
  0x22   :  { %1661 = shalt.err (!%p1658_p1)
}
  0x23   :  { %27 = dma.hbm_to_vmem [thread:$0]  %s2226_s0, 9728, %s1786_s27, [#allocation3], %s1738_s13, %s1738_s13, %s1739_s14  }
  0x24   :  { %s1740_s26 = smov [#allocation7]   ;;  %s1741_s29 = smov [#allocation8]  }
  0x25   :  { %s47_s28 = sshll.u32 %s1740_s26, 4  ;;  %s61_s30 = sshll.u32 %s1741_s29, 4  ;;  %s48_s28 = int_to_ptr.vmem [resolvable:$true] %s47_s28  ;;  %s1823_s30 = int_to_ptr.vmem [resolvable:$true] %s61_s30 }
  0x26   :  { %s1662_s10 = scalar_lea.hbm %s2229_s3, 8192 }
  0x27   :  { %p1663_p2 = scmp.ne.s32.totalorder %s2229_s3, %s1662_s10  ;;  %p1666_p3 = scmp.lt.u32.totalorder %s1662_s10, %s2229_s3 }
  0x29   :  { %p1668_p4 = pnand %p1666_p3, %p1663_p2 }
  0x2b   :  { %1671 = shalt.err (!%p1668_p4)
}
  0x2c   :  { %s1672_s0 = scalar_lea.vmem %s48_s28, 8192  ;;  %p1677_p6 = scmp.lt.s32.totalorder %s48_s28, %s48_s28 }
  0x2d   :  { %p1673_p5 = scmp.ne.s32.totalorder %s48_s28, %s1672_s0  ;;  %p1678_p7 = scmp.lt.s32.totalorder %s1672_s0, %s1672_s0 }
  0x2f   :  { %p1679_p8 = por %p1678_p7, %p1677_p6 }
  0x31   :  { %p1680_p9 = pnand %p1679_p8, %p1673_p5 }
  0x33   :  { %1683 = shalt.err (!%p1680_p9)
}
  0x34   :  { %53 = dma.hbm_to_vmem [thread:$0]  %s2229_s3, 8192, %s48_s28, [#allocation6], %s1738_s13, %s1738_s13, %s1739_s14  }
  0x35   :  { %s1684_s20 = scalar_lea.hbm %s2231_s5, 4096 }
  0x36   :  { %p1685_p10 = scmp.ne.s32.totalorder %s2231_s5, %s1684_s20  ;;  %p1688_p11 = scmp.lt.u32.totalorder %s1684_s20, %s2231_s5 }
  0x38   :  { %p1690_p12 = pnand %p1688_p11, %p1685_p10 }
  0x3a   :  { %1693 = shalt.err (!%p1690_p12)
}
  0x3b   :  { %s1694_s1 = scalar_lea.vmem %s1823_s30, 4096  ;;  %p1699_p0 = scmp.lt.s32.totalorder %s1823_s30, %s1823_s30 }
  0x3c   :  { %p1695_p13 = scmp.ne.s32.totalorder %s1823_s30, %s1694_s1  ;;  %p1700_p1 = scmp.lt.s32.totalorder %s1694_s1, %s1694_s1 }
  0x3e   :  { %p1701_p2 = por %p1700_p1, %p1699_p0 }
  0x40   :  { %p1702_p3 = pnand %p1701_p2, %p1695_p13 }
  0x42   :  { %1705 = shalt.err (!%p1702_p3)
}
  0x43   :  { %s1742_s3 = smov 128   ;;  %s1743_s13 = smov 8  }
  0x44   :  { %67 = dma.hbm_to_vmem [thread:$0]  %s2231_s5, 4096, %s1823_s30, [#allocation9], %s1742_s3, %s1742_s3, %s1743_s13  }
  0x45   :  { %1728 = dma.done.wait [#allocation3], 9728  }
  0x46   :  { %1729 = vsyncadd [#allocation3], 4294957568 }
  0x47   :  { %1730 = dma.done.wait [#allocation6], 16384  }
  0x48   :  { %1731 = vsyncadd [#allocation6], 4294950912 }
  0x49   :  { %1732 = dma.done.wait [#allocation9], 4096  }
  0x4a   :  { %1733 = vsyncadd [#allocation9], 4294963200  ;;  %v159_v0 = vld [vmem:[#allocation5 + $0x8] sm:$0xff]  ;;  %v161_v1 = vld [vmem:[#allocation5 + $0x18] sm:$0xff] }
  0x4b   :  { %v158_v2 = vld [vmem:[#allocation5] sm:$0xff]  ;;  %v1400_v3 = vpack.c.bf16 %v161_v1, %v159_v0  ;;  %v160_v4 = vld [vmem:[#allocation5 + $0x10] sm:$0xff]  ;;  %v163_v5 = vld [vmem:[#allocation5 + $0x28] sm:$0xff] }
  0x4c   :  { %v165_v6 = vld [vmem:[#allocation5 + $0x38] sm:$0xff]  ;;  %v1402_v7 = vpack.c.bf16 %v160_v4, %v158_v2  ;;  %v162_v9 = vld [vmem:[#allocation5 + $0x20] sm:$0xff]  ;;  %v164_v10 = vld [vmem:[#allocation5 + $0x30] sm:$0xff] }
  0x4d   :  { %v1404_v8 = vpack.c.bf16 %v165_v6, %v163_v5  ;;  %v167_v11 = vld [vmem:[#allocation5 + $0x48] sm:$0xff]  ;;  %1401 = vmatprep.subr.bf16.mxu0 %v1400_v3  ;;  %v169_v12 = vld [vmem:[#allocation5 + $0x58] sm:$0xff]  ;;  %1576 = vmatprep.subr.bf16.mxu1 %v1400_v3  ;;  %v1406_v13 = vpack.c.bf16 %v164_v10, %v162_v9  ;;  %v166_v15 = vld [vmem:[#allocation5 + $0x40] sm:$0xff] }
  0x4e   :  { %1403 = vmatpush1.bf16.msra.mxu0 %v1402_v7  ;;  %1592 = vmatpush1.bf16.msra.mxu1 %v1402_v7  ;;  %v1408_v14 = vpack.c.bf16 %v169_v12, %v167_v11  ;;  %v168_v16 = vld [vmem:[#allocation5 + $0x50] sm:$0xff]  ;;  %v171_v17 = vld [vmem:[#allocation5 + $0x68] sm:$0xff]  ;;  %v173_v18 = vld [vmem:[#allocation5 + $0x78] sm:$0xff] }
  0x4f   :  { %1405 = vmatprep.subr.bf16.mxu0 %v1404_v8  ;;  %1577 = vmatprep.subr.bf16.mxu1 %v1404_v8  ;;  %v1410_v19 = vpack.c.bf16 %v168_v16, %v166_v15  ;;  %v1412_v20 = vpack.c.bf16 %v173_v18, %v171_v17  ;;  %v170_v21 = vld [vmem:[#allocation5 + $0x60] sm:$0xff]  ;;  %v172_v22 = vld [vmem:[#allocation5 + $0x70] sm:$0xff]  ;;  %v175_v23 = vld [vmem:[#allocation5 + $0x88] sm:$0xff] }
  0x50   :  { %v177_v24 = vld [vmem:[#allocation5 + $0x98] sm:$0xff]  ;;  %v1414_v25 = vpack.c.bf16 %v172_v22, %v170_v21  ;;  %v174_v27 = vld [vmem:[#allocation5 + $0x80] sm:$0xff]  ;;  %v176_v28 = vld [vmem:[#allocation5 + $0x90] sm:$0xff] }
  0x51   :  { %v1416_v26 = vpack.c.bf16 %v177_v24, %v175_v23  ;;  %v179_v29 = vld [vmem:[#allocation5 + $0xa8] sm:$0xff]  ;;  %v181_v30 = vld [vmem:[#allocation5 + $0xb8] sm:$0xff]  ;;  %v1418_v31 = vpack.c.bf16 %v176_v28, %v174_v27  ;;  %v178_v33 = vld [vmem:[#allocation5 + $0xa0] sm:$0xff] }
  0x52   :  { %1407 = vmatpush1.bf16.msra.mxu0 %v1406_v13  ;;  %1593 = vmatpush1.bf16.msra.mxu1 %v1406_v13  ;;  %v1420_v32 = vpack.c.bf16 %v181_v30, %v179_v29  ;;  %v180_v34 = vld [vmem:[#allocation5 + $0xb0] sm:$0xff]  ;;  %v183_v35 = vld [vmem:[#allocation5 + $0xc8] sm:$0xff]  ;;  %v185_v36 = vld [vmem:[#allocation5 + $0xd8] sm:$0xff] }
  0x53   :  { %1409 = vmatprep.subr.bf16.mxu0 %v1408_v14  ;;  %1578 = vmatprep.subr.bf16.mxu1 %v1408_v14  ;;  %v1422_v37 = vpack.c.bf16 %v180_v34, %v178_v33  ;;  %v1424_v38 = vpack.c.bf16 %v185_v36, %v183_v35  ;;  %v182_v39 = vld [vmem:[#allocation5 + $0xc0] sm:$0xff]  ;;  %v184_v40 = vld [vmem:[#allocation5 + $0xd0] sm:$0xff]  ;;  %v83_v41 = vld [vmem:[#allocation2 + $0x8] sm:$0xff] }
  0x54   :  { %v187_v42 = vld [vmem:[#allocation5 + $0xe8] sm:$0xff]  ;;  %v189_v43 = vld [vmem:[#allocation5 + $0xf8] sm:$0xff]  ;;  %298 = vmatprep.mubr.f32.mxu0 %v83_v41  ;;  %v1426_v44 = vpack.c.bf16 %v184_v40, %v182_v39  ;;  %v186_v46 = vld [vmem:[#allocation5 + $0xe0] sm:$0xff] }
  0x55   :  { %v1428_v45 = vpack.c.bf16 %v189_v43, %v187_v42  ;;  %v188_v47 = vld [vmem:[#allocation5 + $0xf0] sm:$0xff]  ;;  %v191_v48 = vld [vmem:[#allocation5 + $0x108] sm:$0xff]  ;;  %v193_v49 = vld [vmem:[#allocation5 + $0x118] sm:$0xff] }
  0x56   :  { %1411 = vmatpush1.bf16.msra.mxu0 %v1410_v19  ;;  %1594 = vmatpush1.bf16.msra.mxu1 %v1410_v19  ;;  %v1430_v50 = vpack.c.bf16 %v188_v47, %v186_v46  ;;  %v1432_v51 = vpack.c.bf16 %v193_v49, %v191_v48  ;;  %v190_v52 = vld [vmem:[#allocation5 + $0x100] sm:$0xff]  ;;  %v192_v53 = vld [vmem:[#allocation5 + $0x110] sm:$0xff]  ;;  %v195_v54 = vld [vmem:[#allocation5 + $0x128] sm:$0xff] }
  0x57   :  { %1413 = vmatprep.subr.bf16.mxu0 %v1412_v20  ;;  %1579 = vmatprep.subr.bf16.mxu1 %v1412_v20  ;;  %v197_v55 = vld [vmem:[#allocation5 + $0x138] sm:$0xff]  ;;  %v1434_v56 = vpack.c.bf16 %v192_v53, %v190_v52  ;;  %v194_v58 = vld [vmem:[#allocation5 + $0x120] sm:$0xff]  ;;  %v196_v59 = vld [vmem:[#allocation5 + $0x130] sm:$0xff] }
  0x58   :  { %v1436_v57 = vpack.c.bf16 %v197_v55, %v195_v54  ;;  %v199_v60 = vld [vmem:[#allocation5 + $0x148] sm:$0xff]  ;;  %v201_v61 = vld [vmem:[#allocation5 + $0x158] sm:$0xff]  ;;  %v1438_v63 = vpack.c.bf16 %v196_v59, %v194_v58  ;;  %v198_v1 = vld [vmem:[#allocation5 + $0x140] sm:$0xff] }
  0x59   :  { %v121_v62 = vld [vmem:[#allocation2 + $0x138] sm:$0xff]  ;;  %v1440_v0 = vpack.c.bf16 %v201_v61, %v199_v60  ;;  %v200_v2 = vld [vmem:[#allocation5 + $0x150] sm:$0xff]  ;;  %v203_v3 = vld [vmem:[#allocation5 + $0x168] sm:$0xff] }
  0x5a   :  { %1415 = vmatpush1.bf16.msra.mxu0 %v1414_v25  ;;  %1595 = vmatpush1.bf16.msra.mxu1 %v1414_v25  ;;  %v205_v4 = vld [vmem:[#allocation5 + $0x178] sm:$0xff]  ;;  %v1442_v5 = vpack.c.bf16 %v200_v2, %v198_v1  ;;  %v202_v7 = vld [vmem:[#allocation5 + $0x160] sm:$0xff]  ;;  %v204_v8 = vld [vmem:[#allocation5 + $0x170] sm:$0xff] }
  0x5b   :  { %1417 = vmatprep.subr.bf16.mxu0 %v1416_v26  ;;  %1580 = vmatprep.subr.bf16.mxu1 %v1416_v26  ;;  %v1444_v6 = vpack.c.bf16 %v205_v4, %v203_v3  ;;  %v207_v9 = vld [vmem:[#allocation5 + $0x188] sm:$0xff]  ;;  %v209_v10 = vld [vmem:[#allocation5 + $0x198] sm:$0xff]  ;;  %v1446_v11 = vpack.c.bf16 %v204_v8, %v202_v7  ;;  %v206_v13 = vld [vmem:[#allocation5 + $0x180] sm:$0xff] }
  0x5c   :  { %412 = vmatprep.mubr.f32.mxu1 %v121_v62  ;;  %v1448_v12 = vpack.c.bf16 %v209_v10, %v207_v9  ;;  %v208_v14 = vld [vmem:[#allocation5 + $0x190] sm:$0xff]  ;;  %v211_v15 = vld [vmem:[#allocation5 + $0x1a8] sm:$0xff]  ;;  %v213_v16 = vld [vmem:[#allocation5 + $0x1b8] sm:$0xff] }
  0x5d   :  { %v1450_v17 = vpack.c.bf16 %v208_v14, %v206_v13  ;;  %v1452_v18 = vpack.c.bf16 %v213_v16, %v211_v15  ;;  %v210_v19 = vld [vmem:[#allocation5 + $0x1a0] sm:$0xff]  ;;  %v212_v20 = vld [vmem:[#allocation5 + $0x1b0] sm:$0xff]  ;;  %v215_v21 = vld [vmem:[#allocation5 + $0x1c8] sm:$0xff] }
  0x5e   :  { %1419 = vmatpush1.bf16.msra.mxu0 %v1418_v31  ;;  %1596 = vmatpush1.bf16.msra.mxu1 %v1418_v31  ;;  %v217_v22 = vld [vmem:[#allocation5 + $0x1d8] sm:$0xff]  ;;  %v1454_v23 = vpack.c.bf16 %v212_v20, %v210_v19  ;;  %v214_v25 = vld [vmem:[#allocation5 + $0x1c0] sm:$0xff]  ;;  %v216_v26 = vld [vmem:[#allocation5 + $0x1d0] sm:$0xff] }
  0x5f   :  { %1421 = vmatprep.subr.bf16.mxu0 %v1420_v32  ;;  %1581 = vmatprep.subr.bf16.mxu1 %v1420_v32  ;;  %v1456_v24 = vpack.c.bf16 %v217_v22, %v215_v21  ;;  %v219_v27 = vld [vmem:[#allocation5 + $0x1e8] sm:$0xff]  ;;  %v221_v28 = vld [vmem:[#allocation5 + $0x1f8] sm:$0xff]  ;;  %v1458_v29 = vpack.c.bf16 %v216_v26, %v214_v25  ;;  %v218_v31 = vld [vmem:[#allocation5 + $0x1e0] sm:$0xff] }
  0x60   :  { %v1460_v30 = vpack.c.bf16 %v221_v28, %v219_v27  ;;  %v220_v32 = vld [vmem:[#allocation5 + $0x1f0] sm:$0xff]  ;;  %v604_v33 = vld [vmem:[#allocation7 + $0x8] sm:$0xff]  ;;  %v606_v34 = vld [vmem:[#allocation7 + $0x18] sm:$0xff] }
  0x61   :  { %v1462_v35 = vpack.c.bf16 %v220_v32, %v218_v31  ;;  %v1464_v36 = vpack.c.bf16 %v606_v34, %v604_v33  ;;  %v608_v39 = vld [vmem:[#allocation7 + $0x28] sm:$0xff]  ;;  %v610_v40 = vld [vmem:[#allocation7 + $0x38] sm:$0xff]  ;;  %v82_v41 = vld [vmem:[#allocation2] sm:$0xff] }
  0x62   :  { %1423 = vmatpush1.bf16.msra.mxu0 %v1422_v37  ;;  %1597 = vmatpush1.bf16.msra.mxu1 %v1422_v37  ;;  %v603_v37 = vld [vmem:[#allocation7] sm:$0xff]  ;;  %v120_v42 = vld [vmem:[#allocation2 + $0x130] sm:$0xff]  ;;  %v85_v43 = vld [vmem:[#allocation2 + $0x18] sm:$0xff]  ;;  %v1468_v46 = vpack.c.bf16 %v610_v40, %v608_v39 }
  0x63   :  { %1425 = vmatprep.subr.bf16.mxu0 %v1424_v38  ;;  %1582 = vmatprep.subr.bf16.mxu1 %v1424_v38  ;;  %v605_v38 = vld [vmem:[#allocation7 + $0x10] sm:$0xff]  ;;  %v607_v47 = vld [vmem:[#allocation7 + $0x20] sm:$0xff]  ;;  %v612_v49 = vld [vmem:[#allocation7 + $0x48] sm:$0xff] }
  0x64   :  { %v609_v48 = vld [vmem:[#allocation7 + $0x30] sm:$0xff]  ;;  %v122_v52 = vld [vmem:[#allocation2 + $0x140] sm:$0xff]  ;;  %v87_v53 = vld [vmem:[#allocation2 + $0x28] sm:$0xff] }
  0x65   :  { %v125_v54 = vld [vmem:[#allocation2 + $0x158] sm:$0xff]  ;;  %v1470_v55 = vpack.c.bf16 %v609_v48, %v607_v47  ;;  %v613_v58 = vld [vmem:[#allocation7 + $0x50] sm:$0xff]  ;;  %v616_v59 = vld [vmem:[#allocation7 + $0x68] sm:$0xff] }
  0x66   :  { %1427 = vmatpush1.bf16.msra.mxu0 %v1426_v44  ;;  %1598 = vmatpush1.bf16.msra.mxu1 %v1426_v44  ;;  %v123_v44 = vld [vmem:[#allocation2 + $0x148] sm:$0xff]  ;;  %v618_v60 = vld [vmem:[#allocation7 + $0x78] sm:$0xff]  ;;  %v86_v61 = vld [vmem:[#allocation2 + $0x20] sm:$0xff] }
  0x67   :  { %1429 = vmatprep.subr.bf16.mxu0 %v1428_v45  ;;  %1583 = vmatprep.subr.bf16.mxu1 %v1428_v45  ;;  %v1466_v45 = vpack.c.bf16 %v605_v38, %v603_v37  ;;  %v124_v62 = vld [vmem:[#allocation2 + $0x150] sm:$0xff]  ;;  %v1476_v2 = vpack.c.bf16 %v618_v60, %v616_v59  ;;  %v615_v3 = vld [vmem:[#allocation7 + $0x60] sm:$0xff]  ;;  %v91_v9 = vld [vmem:[#allocation2 + $0x48] sm:$0xff] }
  0x68   :  { %v617_v4 = vld [vmem:[#allocation7 + $0x70] sm:$0xff]  ;;  %v126_v8 = vld [vmem:[#allocation2 + $0x160] sm:$0xff]  ;;  %v129_v10 = vld [vmem:[#allocation2 + $0x178] sm:$0xff] }
  0x69   :  { %v88_v7 = vld [vmem:[#allocation2 + $0x30] sm:$0xff]  ;;  %v619_v13 = vld [vmem:[#allocation7 + $0x80] sm:$0xff]  ;;  %v624_v15 = vld [vmem:[#allocation7 + $0xa8] sm:$0xff] }
  0x6a   :  { %1431 = vmatpush1.bf16.msra.mxu0 %v1430_v50  ;;  %1599 = vmatpush1.bf16.msra.mxu1 %v1430_v50  ;;  %v614_v50 = vld [vmem:[#allocation7 + $0x58] sm:$0xff]  ;;  %v621_v14 = vld [vmem:[#allocation7 + $0x90] sm:$0xff]  ;;  %v131_v20 = vld [vmem:[#allocation2 + $0x188] sm:$0xff] }
  0x6b   :  { %1433 = vmatprep.subr.bf16.mxu0 %v1432_v51  ;;  %1584 = vmatprep.subr.bf16.mxu1 %v1432_v51  ;;  %v84_v51 = vld [vmem:[#allocation2 + $0x10] sm:$0xff]  ;;  %v626_v16 = vld [vmem:[#allocation7 + $0xb8] sm:$0xff]  ;;  %v1482_v21 = vpack.c.bf16 %v621_v14, %v619_v13  ;;  %v628_v25 = vld [vmem:[#allocation7 + $0xc8] sm:$0xff] }
  0x6c   :  { %v93_v19 = vld [vmem:[#allocation2 + $0x58] sm:$0xff]  ;;  %v1484_v22 = vpack.c.bf16 %v626_v16, %v624_v15  ;;  %v92_v27 = vld [vmem:[#allocation2 + $0x50] sm:$0xff]  ;;  %v130_v28 = vld [vmem:[#allocation2 + $0x180] sm:$0xff] }
  0x6d   :  { %v630_v26 = vld [vmem:[#allocation7 + $0xd8] sm:$0xff]  ;;  %v627_v33 = vld [vmem:[#allocation7 + $0xc0] sm:$0xff]  ;;  %v629_v34 = vld [vmem:[#allocation7 + $0xd0] sm:$0xff] }
  0x6e   :  { %1435 = vmatpush1.bf16.msra.mxu0 %v1434_v56  ;;  %1600 = vmatpush1.bf16.msra.mxu1 %v1434_v56  ;;  %v1472_v56 = vpack.c.bf16 %v614_v50, %v612_v49  ;;  %v1488_v32 = vpack.c.bf16 %v630_v26, %v628_v25  ;;  %v94_v37 = vld [vmem:[#allocation2 + $0x60] sm:$0xff]  ;;  %v132_v38 = vld [vmem:[#allocation2 + $0x190] sm:$0xff]  ;;  %v97_v39 = vld [vmem:[#allocation2 + $0x78] sm:$0xff] }
  0x6f   :  { %1437 = vmatprep.subr.bf16.mxu0 %v1436_v57  ;;  %1585 = vmatprep.subr.bf16.mxu1 %v1436_v57  ;;  %v611_v57 = vld [vmem:[#allocation7 + $0x40] sm:$0xff]  ;;  %v135_v40 = vld [vmem:[#allocation2 + $0x1a8] sm:$0xff]  ;;  %v96_v47 = vld [vmem:[#allocation2 + $0x70] sm:$0xff] }
  0x70   :  { %v1474_v1 = vpack.c.bf16 %v613_v58, %v611_v57  ;;  %v134_v48 = vld [vmem:[#allocation2 + $0x1a0] sm:$0xff]  ;;  %v99_v49 = vld [vmem:[#allocation2 + $0x88] sm:$0xff]  ;;  %v137_v50 = vld [vmem:[#allocation2 + $0x1b8] sm:$0xff] }
  0x71   :  { %v98_v57 = vld [vmem:[#allocation2 + $0x80] sm:$0xff]  ;;  %v136_v58 = vld [vmem:[#allocation2 + $0x1b0] sm:$0xff]  ;;  %v101_v59 = vld [vmem:[#allocation2 + $0x98] sm:$0xff] }
  0x72   :  { %1439 = vmatpush1.bf16.msra.mxu0 %v1438_v63  ;;  %1601 = vmatpush1.bf16.msra.mxu1 %v1438_v63  ;;  %v89_v63 = vld [vmem:[#allocation2 + $0x38] sm:$0xff]  ;;  %v139_v60 = vld [vmem:[#allocation2 + $0x1c8] sm:$0xff]  ;;  %v102_v13 = vld [vmem:[#allocation2 + $0xa0] sm:$0xff] }
  0x73   :  { %1441 = vmatprep.subr.bf16.mxu0 %v1440_v0  ;;  %1586 = vmatprep.subr.bf16.mxu1 %v1440_v0  ;;  %v127_v0 = vld [vmem:[#allocation2 + $0x168] sm:$0xff]  ;;  %v140_v14 = vld [vmem:[#allocation2 + $0x1d0] sm:$0xff]  ;;  %v105_v15 = vld [vmem:[#allocation2 + $0xb8] sm:$0xff] }
  0x74   :  { %v143_v16 = vld [vmem:[#allocation2 + $0x1e8] sm:$0xff]  ;;  %v145_v26 = vld [vmem:[#allocation2 + $0x1f8] sm:$0xff] }
  0x75   :  { %v107_v25 = vld [vmem:[#allocation2 + $0xc8] sm:$0xff] }
  0x76   :  { %1443 = vmatpush1.bf16.msra.mxu0 %v1442_v5  ;;  %1602 = vmatpush1.bf16.msra.mxu1 %v1442_v5  ;;  %v620_v5 = vld [vmem:[#allocation7 + $0x88] sm:$0xff] }
  0x77   :  { %1445 = vmatprep.subr.bf16.mxu0 %v1444_v6  ;;  %1587 = vmatprep.subr.bf16.mxu1 %v1444_v6  ;;  %v622_v6 = vld [vmem:[#allocation7 + $0x98] sm:$0xff] }
  0x7a   :  { %1447 = vmatpush1.bf16.msra.mxu0 %v1446_v11  ;;  %1603 = vmatpush1.bf16.msra.mxu1 %v1446_v11  ;;  %v1478_v11 = vpack.c.bf16 %v617_v4, %v615_v3  ;;  %v100_v3 = vld [vmem:[#allocation2 + $0x90] sm:$0xff]  ;;  %v138_v4 = vld [vmem:[#allocation2 + $0x1c0] sm:$0xff] }
  0x7b   :  { %1449 = vmatprep.subr.bf16.mxu0 %v1448_v12  ;;  %1588 = vmatprep.subr.bf16.mxu1 %v1448_v12  ;;  %v1480_v12 = vpack.c.bf16 %v622_v6, %v620_v5  ;;  %v103_v5 = vld [vmem:[#allocation2 + $0xa8] sm:$0xff]  ;;  %v141_v6 = vld [vmem:[#allocation2 + $0x1d8] sm:$0xff] }
  0x7e   :  { %1451 = vmatpush1.bf16.msra.mxu0 %v1450_v17  ;;  %1604 = vmatpush1.bf16.msra.mxu1 %v1450_v17  ;;  %v90_v17 = vld [vmem:[#allocation2 + $0x40] sm:$0xff] }
  0x7f   :  { %1453 = vmatprep.subr.bf16.mxu0 %v1452_v18  ;;  %1589 = vmatprep.subr.bf16.mxu1 %v1452_v18  ;;  %v128_v18 = vld [vmem:[#allocation2 + $0x170] sm:$0xff] }
  0x82   :  { %1455 = vmatpush1.bf16.msra.mxu0 %v1454_v23  ;;  %1605 = vmatpush1.bf16.msra.mxu1 %v1454_v23  ;;  %v623_v23 = vld [vmem:[#allocation7 + $0xa0] sm:$0xff] }
  0x83   :  { %1457 = vmatprep.subr.bf16.mxu0 %v1456_v24  ;;  %1590 = vmatprep.subr.bf16.mxu1 %v1456_v24  ;;  %v625_v24 = vld [vmem:[#allocation7 + $0xb0] sm:$0xff] }
  0x84   :  { %v1486_v31 = vpack.c.bf16 %v625_v24, %v623_v23  ;;  %v104_v23 = vld [vmem:[#allocation2 + $0xb0] sm:$0xff]  ;;  %v142_v24 = vld [vmem:[#allocation2 + $0x1e0] sm:$0xff] }
  0x86   :  { %1459 = vmatpush1.bf16.msra.mxu0 %v1458_v29  ;;  %1606 = vmatpush1.bf16.msra.mxu1 %v1458_v29  ;;  %v95_v29 = vld [vmem:[#allocation2 + $0x68] sm:$0xff] }
  0x87   :  { %1461 = vmatprep.subr.bf16.mxu0 %v1460_v30  ;;  %1591 = vmatprep.subr.bf16.mxu1 %v1460_v30  ;;  %v133_v30 = vld [vmem:[#allocation2 + $0x198] sm:$0xff] }
  0x8a   :  { %1463 = vmatpush1.bf16.msra.mxu0 %v1462_v35  ;;  %1607 = vmatpush1.bf16.msra.mxu1 %v1462_v35  ;;  %v632_v35 = vld [vmem:[#allocation7 + $0xe8] sm:$0xff] }
  0x8b   :  { %1465 = vmatprep.subr.bf16.mxu1 %v1464_v36  ;;  %v634_v36 = vld [vmem:[#allocation7 + $0xf8] sm:$0xff] }
  0x8d   :  { %299 = vmatmul.mubr.f32.vlgmr.msra.gmra.mrb[0].mxu0 %v82_v41  ;;  %413 = vmatmul.mubr.f32.vlgmr.msra.gmra.mrb[0].mxu1 %v120_v42  ;;  %v1490_v41 = vpack.c.bf16 %v629_v34, %v627_v33  ;;  %v1492_v42 = vpack.c.bf16 %v634_v36, %v632_v35  ;;  %v106_v33 = vld [vmem:[#allocation2 + $0xc0] sm:$0xff]  ;;  %v144_v34 = vld [vmem:[#allocation2 + $0x1f0] sm:$0xff]  ;;  %v109_v35 = vld [vmem:[#allocation2 + $0xd8] sm:$0xff] }
  0x8e   :  { %304 = vmatprep.mubr.f32.mxu0 %v85_v43  ;;  %418 = vmatprep.mubr.f32.mxu1 %v123_v44  ;;  %v631_v43 = vld [vmem:[#allocation7 + $0xe0] sm:$0xff]  ;;  %v633_v44 = vld [vmem:[#allocation7 + $0xf0] sm:$0xff]  ;;  %v147_v36 = vld [vmem:[#allocation2 + $0x208] sm:$0xff] }
  0x8f   :  { %1467 = vmatpush1.bf16.msra.mxu1 %v1466_v45  ;;  %v636_v45 = vld [vmem:[#allocation7 + $0x108] sm:$0xff] }
  0x90   :  { %1469 = vmatprep.subr.bf16.mxu1 %v1468_v46  ;;  %v638_v46 = vld [vmem:[#allocation7 + $0x118] sm:$0xff] }
  0x91   :  { %305 = vmatmul.mubr.f32.gmra.mrb[2].mxu0 %v84_v51  ;;  %419 = vmatmul.mubr.f32.gmra.mrb[2].mxu1 %v122_v52  ;;  %v1494_v51 = vpack.c.bf16 %v633_v44, %v631_v43  ;;  %v1496_v52 = vpack.c.bf16 %v638_v46, %v636_v45  ;;  %v108_v43 = vld [vmem:[#allocation2 + $0xd0] sm:$0xff]  ;;  %v146_v44 = vld [vmem:[#allocation2 + $0x200] sm:$0xff]  ;;  %v111_v45 = vld [vmem:[#allocation2 + $0xe8] sm:$0xff] }
  0x92   :  { %310 = vmatprep.mubr.f32.mxu0 %v87_v53  ;;  %424 = vmatprep.mubr.f32.mxu1 %v125_v54  ;;  %v635_v53 = vld [vmem:[#allocation7 + $0x100] sm:$0xff]  ;;  %v637_v54 = vld [vmem:[#allocation7 + $0x110] sm:$0xff]  ;;  %v149_v46 = vld [vmem:[#allocation2 + $0x218] sm:$0xff] }
  0x93   :  { %1471 = vmatpush1.bf16.msra.mxu1 %v1470_v55  ;;  %v640_v55 = vld [vmem:[#allocation7 + $0x128] sm:$0xff] }
  0x94   :  { %1473 = vmatprep.subr.bf16.mxu1 %v1472_v56  ;;  %v642_v56 = vld [vmem:[#allocation7 + $0x138] sm:$0xff] }
  0x95   :  { %311 = vmatmul.mubr.f32.gmra.mrb[4].mxu0 %v86_v61  ;;  %425 = vmatmul.mubr.f32.gmra.mrb[4].mxu1 %v124_v62  ;;  %v1498_v61 = vpack.c.bf16 %v637_v54, %v635_v53  ;;  %v1500_v62 = vpack.c.bf16 %v642_v56, %v640_v55  ;;  %v113_v53 = vld [vmem:[#allocation2 + $0xf8] sm:$0xff]  ;;  %v151_v54 = vld [vmem:[#allocation2 + $0x228] sm:$0xff]  ;;  %v112_v56 = vld [vmem:[#allocation2 + $0xf0] sm:$0xff] }
  0x96   :  { %316 = vmatprep.mubr.f32.mxu0 %v89_v63  ;;  %430 = vmatprep.mubr.f32.mxu1 %v127_v0  ;;  %v639_v63 = vld [vmem:[#allocation7 + $0x120] sm:$0xff]  ;;  %v641_v0 = vld [vmem:[#allocation7 + $0x130] sm:$0xff] }
  0x97   :  { %1475 = vmatpush1.bf16.msra.mxu1 %v1474_v1  ;;  %v644_v1 = vld [vmem:[#allocation7 + $0x148] sm:$0xff] }
  0x98   :  { %1477 = vmatprep.subr.bf16.mxu1 %v1476_v2  ;;  %v646_v2 = vld [vmem:[#allocation7 + $0x158] sm:$0xff] }
  0x99   :  { %317 = vmatmul.mubr.f32.gmra.mrb[6].mxu0 %v88_v7  ;;  %431 = vmatmul.mubr.f32.gmra.mrb[6].mxu1 %v126_v8  ;;  %v1502_v7 = vpack.c.bf16 %v641_v0, %v639_v63  ;;  %v1504_v8 = vpack.c.bf16 %v646_v2, %v644_v1  ;;  %v155_v63 = vld [vmem:[#allocation2 + $0x248] sm:$0xff]  ;;  %v116_v0 = vld [vmem:[#allocation2 + $0x110] sm:$0xff]  ;;  %v154_v1 = vld [vmem:[#allocation2 + $0x240] sm:$0xff] }
  0x9a   :  { %322 = vmatprep.mubr.f32.mxu0 %v91_v9  ;;  %436 = vmatprep.mubr.f32.mxu1 %v129_v10  ;;  %v643_v9 = vld [vmem:[#allocation7 + $0x140] sm:$0xff]  ;;  %v645_v10 = vld [vmem:[#allocation7 + $0x150] sm:$0xff]  ;;  %v119_v2 = vld [vmem:[#allocation2 + $0x128] sm:$0xff] }
  0x9b   :  { %1479 = vmatpush1.bf16.msra.mxu1 %v1478_v11  ;;  %v648_v11 = vld [vmem:[#allocation7 + $0x168] sm:$0xff] }
  0x9c   :  { %1481 = vmatprep.subr.bf16.mxu1 %v1480_v12  ;;  %v650_v12 = vld [vmem:[#allocation7 + $0x178] sm:$0xff] }
  0x9d   :  { %323 = vmatmul.mubr.f32.gmra.mrb[8].mxu0 %v90_v17  ;;  %437 = vmatmul.mubr.f32.gmra.mrb[8].mxu1 %v128_v18  ;;  %v1506_v17 = vpack.c.bf16 %v645_v10, %v643_v9  ;;  %v1508_v18 = vpack.c.bf16 %v650_v12, %v648_v11  ;;  %v663_v9 = vld [vmem:[#allocation7 + $0x1e0] sm:$0xff]  ;;  %v665_v10 = vld [vmem:[#allocation7 + $0x1f0] sm:$0xff]  ;;  %v224_v12 = vlaneseq }
  0x9e   :  { %328 = vmatprep.mubr.f32.mxu0 %v93_v19  ;;  %442 = vmatprep.mubr.f32.mxu1 %v131_v20  ;;  %v647_v19 = vld [vmem:[#allocation7 + $0x160] sm:$0xff]  ;;  %v649_v20 = vld [vmem:[#allocation7 + $0x170] sm:$0xff]  ;;  %v1526_v11 = vpack.c.bf16 %v665_v10, %v663_v9  ;;  %v1051_v9 = vld [vmem:[#allocation8 + $0x18] sm:$0xff] }
  0x9f   :  { %1483 = vmatpush1.bf16.msra.mxu1 %v1482_v21  ;;  %v652_v21 = vld [vmem:[#allocation7 + $0x188] sm:$0xff] }
  0xa0   :  { %1485 = vmatprep.subr.bf16.mxu1 %v1484_v22  ;;  %v654_v22 = vld [vmem:[#allocation7 + $0x198] sm:$0xff] }
  0xa1   :  { %329 = vmatmul.mubr.f32.gmra.mrb[10].mxu0 %v92_v27  ;;  %443 = vmatmul.mubr.f32.gmra.mrb[10].mxu1 %v130_v28  ;;  %v1510_v27 = vpack.c.bf16 %v649_v20, %v647_v19  ;;  %v1512_v28 = vpack.c.bf16 %v654_v22, %v652_v21 }
  0xa2   :  { %334 = vmatprep.mubr.f32.mxu0 %v95_v29  ;;  %448 = vmatprep.mubr.f32.mxu1 %v133_v30  ;;  %v651_v29 = vld [vmem:[#allocation7 + $0x180] sm:$0xff]  ;;  %v653_v30 = vld [vmem:[#allocation7 + $0x190] sm:$0xff] }
  0xa3   :  { %1487 = vmatpush1.bf16.msra.mxu1 %v1486_v31  ;;  %v656_v31 = vld [vmem:[#allocation7 + $0x1a8] sm:$0xff] }
  0xa4   :  { %1489 = vmatprep.subr.bf16.mxu1 %v1488_v32  ;;  %v658_v32 = vld [vmem:[#allocation7 + $0x1b8] sm:$0xff] }
  0xa5   :  { %335 = vmatmul.mubr.f32.gmra.mrb[12].mxu0 %v94_v37  ;;  %449 = vmatmul.mubr.f32.gmra.mrb[12].mxu1 %v132_v38  ;;  %v1514_v37 = vpack.c.bf16 %v653_v30, %v651_v29  ;;  %v1516_v38 = vpack.c.bf16 %v658_v32, %v656_v31 }
  0xa6   :  { %340 = vmatprep.mubr.f32.mxu0 %v97_v39  ;;  %454 = vmatprep.mubr.f32.mxu1 %v135_v40  ;;  %v655_v39 = vld [vmem:[#allocation7 + $0x1a0] sm:$0xff]  ;;  %v657_v40 = vld [vmem:[#allocation7 + $0x1b0] sm:$0xff] }
  0xa7   :  { %1491 = vmatpush1.bf16.msra.mxu1 %v1490_v41  ;;  %v660_v41 = vld [vmem:[#allocation7 + $0x1c8] sm:$0xff] }
  0xa8   :  { %1493 = vmatprep.subr.bf16.mxu1 %v1492_v42  ;;  %v662_v42 = vld [vmem:[#allocation7 + $0x1d8] sm:$0xff] }
  0xa9   :  { %341 = vmatmul.mubr.f32.gmra.mrb[14].mxu0 %v96_v47  ;;  %455 = vmatmul.mubr.f32.gmra.mrb[14].mxu1 %v134_v48  ;;  %v1518_v47 = vpack.c.bf16 %v657_v40, %v655_v39  ;;  %v1520_v48 = vpack.c.bf16 %v662_v42, %v660_v41 }
  0xaa   :  { %346 = vmatprep.mubr.f32.mxu0 %v99_v49  ;;  %460 = vmatprep.mubr.f32.mxu1 %v137_v50  ;;  %v659_v49 = vld [vmem:[#allocation7 + $0x1c0] sm:$0xff]  ;;  %v661_v50 = vld [vmem:[#allocation7 + $0x1d0] sm:$0xff] }
  0xab   :  { %1495 = vmatpush1.bf16.msra.mxu1 %v1494_v51  ;;  %v110_v51 = vld [vmem:[#allocation2 + $0xe0] sm:$0xff]  ;;  %v1522_v55 = vpack.c.bf16 %v661_v50, %v659_v49 }
  0xac   :  { %1497 = vmatprep.subr.bf16.mxu1 %v1496_v52  ;;  %v148_v52 = vld [vmem:[#allocation2 + $0x210] sm:$0xff] }
  0xad   :  { %347 = vmatmul.mubr.f32.gmra.mrb[16].mxu0 %v98_v57  ;;  %461 = vmatmul.mubr.f32.gmra.mrb[16].mxu1 %v136_v58  ;;  %v150_v57 = vld [vmem:[#allocation2 + $0x220] sm:$0xff]  ;;  %v115_v58 = vld [vmem:[#allocation2 + $0x108] sm:$0xff] }
  0xae   :  { %352 = vmatprep.mubr.f32.mxu0 %v101_v59  ;;  %466 = vmatprep.mubr.f32.mxu1 %v139_v60  ;;  %v153_v59 = vld [vmem:[#allocation2 + $0x238] sm:$0xff]  ;;  %v114_v60 = vld [vmem:[#allocation2 + $0x100] sm:$0xff] }
  0xaf   :  { %1499 = vmatpush1.bf16.msra.mxu1 %v1498_v61  ;;  %v152_v61 = vld [vmem:[#allocation2 + $0x230] sm:$0xff] }
  0xb0   :  { %1501 = vmatprep.subr.bf16.mxu1 %v1500_v62  ;;  %v117_v62 = vld [vmem:[#allocation2 + $0x118] sm:$0xff] }
  0xb1   :  { %353 = vmatmul.mubr.f32.gmra.mrb[18].mxu0 %v100_v3  ;;  %467 = vmatmul.mubr.f32.gmra.mrb[18].mxu1 %v138_v4  ;;  %v157_v3 = vld [vmem:[#allocation2 + $0x258] sm:$0xff]  ;;  %v118_v4 = vld [vmem:[#allocation2 + $0x120] sm:$0xff] }
  0xb2   :  { %358 = vmatprep.mubr.f32.mxu0 %v103_v5  ;;  %472 = vmatprep.mubr.f32.mxu1 %v141_v6  ;;  %v156_v5 = vld [vmem:[#allocation2 + $0x250] sm:$0xff]  ;;  %v664_v6 = vld [vmem:[#allocation7 + $0x1e8] sm:$0xff] }
  0xb3   :  { %1503 = vmatpush1.bf16.msra.mxu1 %v1502_v7  ;;  %v666_v7 = vld [vmem:[#allocation7 + $0x1f8] sm:$0xff] }
  0xb4   :  { %1505 = vmatprep.subr.bf16.mxu1 %v1504_v8  ;;  %v1524_v8 = vpack.c.bf16 %v666_v7, %v664_v6 }
  0xb5   :  { %359 = vmatmul.mubr.f32.gmra.mrb[20].mxu0 %v102_v13  ;;  %473 = vmatmul.mubr.f32.gmra.mrb[20].mxu1 %v140_v14  ;;  %v1860_v13 = vshrl.u32 %v224_v12, 7 }
  0xb6   :  { %364 = vmatprep.mubr.f32.mxu0 %v105_v15  ;;  %478 = vmatprep.mubr.f32.mxu1 %v143_v16  ;;  %v222_v15 = vld [vmem:[%s2228_s2] sm:$0x3] }
  0xb7   :  { %1507 = vmatpush1.bf16.msra.mxu1 %v1506_v17  ;;  %v226_v14 = vsub.s32 0, %v1860_v13  ;;  %v230_v16 = vsub.s32 1, %v1860_v13 }
  0xb8   :  { %1509 = vmatprep.subr.bf16.mxu1 %v1508_v18 }
  0xb9   :  { %365 = vmatmul.mubr.f32.gmra.mrb[22].mxu0 %v104_v23  ;;  %479 = vmatmul.mubr.f32.gmra.mrb[22].mxu1 %v142_v24  ;;  %v1869_v17 = vrot.slane %v222_v15, %v226_v14  ;;  %v1873_v18 = vrot.slane %v222_v15, %v230_v16 }
  0xba   :  { %370 = vmatprep.mubr.f32.mxu0 %v107_v25  ;;  %484 = vmatprep.mubr.f32.mxu1 %v145_v26 }
  0xbb   :  { %1511 = vmatpush1.bf16.msra.mxu1 %v1510_v27 }
  0xbc   :  { %1513 = vmatprep.subr.bf16.mxu1 %v1512_v28 }
  0xbd   :  { %371 = vmatmul.mubr.f32.gmra.mrb[24].mxu0 %v106_v33  ;;  %485 = vmatmul.mubr.f32.gmra.mrb[24].mxu1 %v144_v34 }
  0xbe   :  { %376 = vmatprep.mubr.f32.mxu0 %v109_v35  ;;  %490 = vmatprep.mubr.f32.mxu1 %v147_v36 }
  0xbf   :  { %1515 = vmatpush1.bf16.msra.mxu1 %v1514_v37 }
  0xc0   :  { %1517 = vmatprep.subr.bf16.mxu1 %v1516_v38 }
  0xc1   :  { %377 = vmatmul.mubr.f32.gmra.mrb[26].mxu0 %v108_v43  ;;  %491 = vmatmul.mubr.f32.gmra.mrb[26].mxu1 %v146_v44 }
  0xc2   :  { %382 = vmatprep.mubr.f32.mxu0 %v111_v45  ;;  %496 = vmatprep.mubr.f32.mxu1 %v149_v46 }
  0xc3   :  { %1519 = vmatpush1.bf16.msra.mxu1 %v1518_v47 }
  0xc4   :  { %1521 = vmatprep.subr.bf16.mxu1 %v1520_v48 }
  0xc5   :  { %383 = vmatmul.mubr.f32.gmra.mrb[28].mxu0 %v110_v51  ;;  %497 = vmatmul.mubr.f32.gmra.mrb[28].mxu1 %v148_v52 }
  0xc6   :  { %388 = vmatprep.mubr.f32.mxu0 %v113_v53  ;;  %502 = vmatprep.mubr.f32.mxu1 %v151_v54 }
  0xc7   :  { %1523 = vmatpush1.bf16.msra.mxu1 %v1522_v55 }
  0xc8   :  { %1525 = vmatprep.subr.bf16.mxu1 %v1524_v8  ;;  %v1050_v8 = vld [vmem:[#allocation8 + $0x10] sm:$0xff] }
  0xc9   :  { %389 = vmatmul.mubr.f32.gmra.mrb[30].mxu0 %v112_v56  ;;  %503 = vmatmul.mubr.f32.gmra.mrb[30].mxu1 %v150_v57 }
  0xca   :  { %394 = vmatprep.mubr.f32.mxu0 %v115_v58  ;;  %508 = vmatprep.mubr.f32.mxu1 %v153_v59 }
  0xcb   :  { %1527 = vmatpush1.bf16.msra.mxu1 %v1526_v11 }
  0xcd   :  { %395 = vmatmul.mubr.f32.gmra.mrb[32].mxu0 %v114_v60  ;;  %509 = vmatmul.mubr.f32.gmra.mrb[32].mxu1 %v152_v61  ;;  %v1744_v60 = vmov 0.0|0.0   ;;  %v1048_v61 = vld [vmem:[#allocation8] sm:$0xff] }
  0xce   :  { %400 = vmatprep.mubr.f32.mxu0 %v117_v62  ;;  %514 = vmatprep.mubr.f32.mxu1 %v155_v63  ;;  %v1049_v62 = vld [vmem:[#allocation8 + $0x8] sm:$0xff] }
  0xcf   :  { %1528 = vmatprep.subr.bf16.mxu0 %v1744_v60 }
  0xd1   :  { %401 = vmatmul.mubr.f32.gmra.mrb[34].mxu0 %v116_v0  ;;  %515 = vmatmul.mubr.f32.gmra.mrb[34].mxu1 %v154_v1 }
  0xd2   :  { %406 = vmatprep.mubr.f32.mxu0 %v119_v2  ;;  %520 = vmatprep.mubr.f32.mxu1 %v157_v3  ;;  %v1529_v3 = vpack.c.bf16 %v1049_v62, %v1048_v61  ;;  %v1058_v61 = vld [vmem:[#allocation8 + $0x50] sm:$0xff]  ;;  %v1059_v62 = vld [vmem:[#allocation8 + $0x58] sm:$0xff] }
  0xd4   :  { %1530 = vmatpush1.bf16.msra.mxu0 %v1529_v3 }
  0xd5   :  { %407 = vmatmul.mubr.f32.gmra.mrb[36].mxu0 %v118_v4  ;;  %521 = vmatmul.mubr.f32.gmra.mrb[36].mxu1 %v156_v5 }
  0xd6   :  { %1531 = vmatprep.subr.bf16.mxu0 %v1744_v60 }
 0x160   :  { %v300_v19 = vpop.f32.mrb[0].mxu0  ;;  %v1875_v20 = vpop.f32.mrb[0].mxu1 }
 0x161   :  { %v301_v21 = vadd.f32 %v300_v19, %v1869_v17  ;;  %v302_v22 = vpop.f32.mrb[1].mxu0  ;;  %v1878_v23 = vpop.f32.mrb[1].mxu1  ;;  %v1532_v19 = vpack.c.bf16 %v1051_v9, %v1050_v8 }
 0x162   :  { %v303_v24 = vadd.f32 %v302_v22, %v1873_v18  ;;  %v1052_v22 = vld [vmem:[#allocation8 + $0x20] sm:$0xff] }
 0x163   :  { %v527_v28 = vmax.f32 %v301_v21, 0.0  ;;  %1533 = vmatpush1.bf16.msra.mxu0 %v1532_v19 }
 0x164   :  { %v528_v25 = vmax.f32 %v303_v24, 0.0  ;;  %v306_v26 = vpop.f32.mrb[2].mxu0  ;;  %v1881_v27 = vpop.f32.mrb[2].mxu1  ;;  %v1053_v24 = vld [vmem:[#allocation8 + $0x28] sm:$0xff]  ;;  %1534 = vmatprep.subr.bf16.mxu0 %v1744_v60 }
 0x165   :  { %v307_v29 = vadd.f32 %v306_v26, %v1869_v17  ;;  %v308_v30 = vpop.f32.mrb[3].mxu0  ;;  %v1884_v31 = vpop.f32.mrb[3].mxu1 }
 0x166   :  { %v309_v32 = vadd.f32 %v308_v30, %v1873_v18  ;;  %743 = vmatprep.mubr.f32.mxu1 %v528_v25  ;;  %v1054_v30 = vld [vmem:[#allocation8 + $0x30] sm:$0xff] }
 0x167   :  { %744 = vmatmul.mubr.f32.vlgmr.msra.gmra.mrb[38].mxu1 %v527_v28  ;;  %v529_v36 = vmax.f32 %v307_v29, 0.0  ;;  %v1535_v29 = vpack.c.bf16 %v1053_v24, %v1052_v22 }
 0x168   :  { %v530_v33 = vmax.f32 %v309_v32, 0.0  ;;  %v312_v34 = vpop.f32.mrb[4].mxu0  ;;  %v1887_v35 = vpop.f32.mrb[4].mxu1  ;;  %v1055_v32 = vld [vmem:[#allocation8 + $0x38] sm:$0xff] }
 0x169   :  { %v313_v37 = vadd.f32 %v312_v34, %v1869_v17  ;;  %v314_v38 = vpop.f32.mrb[5].mxu0  ;;  %v1890_v39 = vpop.f32.mrb[5].mxu1  ;;  %1536 = vmatpush1.bf16.msra.mxu0 %v1535_v29 }
 0x16a   :  { %v315_v40 = vadd.f32 %v314_v38, %v1873_v18  ;;  %749 = vmatprep.mubr.f32.mxu1 %v530_v33  ;;  %1537 = vmatprep.subr.bf16.mxu0 %v1744_v60 }
 0x16b   :  { %750 = vmatmul.mubr.f32.gmra.mrb[40].mxu1 %v529_v36  ;;  %v531_v44 = vmax.f32 %v313_v37, 0.0 }
 0x16c   :  { %v532_v41 = vmax.f32 %v315_v40, 0.0  ;;  %v318_v42 = vpop.f32.mrb[6].mxu0  ;;  %v1893_v43 = vpop.f32.mrb[6].mxu1  ;;  %v1538_v40 = vpack.c.bf16 %v1055_v32, %v1054_v30  ;;  %v1062_v32 = vld [vmem:[#allocation8 + $0x70] sm:$0xff] }
 0x16d   :  { %v319_v45 = vadd.f32 %v318_v42, %v1869_v17  ;;  %v320_v46 = vpop.f32.mrb[7].mxu0  ;;  %v1896_v47 = vpop.f32.mrb[7].mxu1 }
 0x16e   :  { %v321_v48 = vadd.f32 %v320_v46, %v1873_v18  ;;  %755 = vmatprep.mubr.f32.mxu1 %v532_v41  ;;  %v1057_v46 = vld [vmem:[#allocation8 + $0x48] sm:$0xff]  ;;  %1539 = vmatpush1.bf16.msra.mxu0 %v1538_v40 }
 0x16f   :  { %756 = vmatmul.mubr.f32.gmra.mrb[42].mxu1 %v531_v44  ;;  %v533_v52 = vmax.f32 %v319_v45, 0.0  ;;  %v1056_v45 = vld [vmem:[#allocation8 + $0x40] sm:$0xff]  ;;  %1540 = vmatprep.subr.bf16.mxu0 %v1744_v60 }
 0x170   :  { %v534_v49 = vmax.f32 %v321_v48, 0.0  ;;  %v324_v50 = vpop.f32.mrb[8].mxu0  ;;  %v1899_v51 = vpop.f32.mrb[8].mxu1 }
 0x171   :  { %v325_v53 = vadd.f32 %v324_v50, %v1869_v17  ;;  %v326_v54 = vpop.f32.mrb[9].mxu0  ;;  %v1902_v55 = vpop.f32.mrb[9].mxu1 }
 0x172   :  { %v327_v56 = vadd.f32 %v326_v54, %v1873_v18  ;;  %761 = vmatprep.mubr.f32.mxu1 %v534_v49  ;;  %v1541_v54 = vpack.c.bf16 %v1057_v46, %v1056_v45 }
 0x173   :  { %762 = vmatmul.mubr.f32.gmra.mrb[44].mxu1 %v533_v52  ;;  %v535_v63 = vmax.f32 %v325_v53, 0.0 }
 0x174   :  { %v536_v57 = vmax.f32 %v327_v56, 0.0  ;;  %v330_v58 = vpop.f32.mrb[10].mxu0  ;;  %v1905_v59 = vpop.f32.mrb[10].mxu1  ;;  %1542 = vmatpush1.bf16.msra.mxu0 %v1541_v54 }
 0x175   :  { %v331_v0 = vadd.f32 %v330_v58, %v1869_v17  ;;  %v332_v1 = vpop.f32.mrb[11].mxu0  ;;  %v1909_v2 = vpop.f32.mrb[11].mxu1  ;;  %1543 = vmatprep.subr.bf16.mxu0 %v1744_v60 }
 0x176   :  { %v333_v4 = vadd.f32 %v332_v1, %v1873_v18  ;;  %767 = vmatprep.mubr.f32.mxu1 %v536_v57 }
 0x177   :  { %768 = vmatmul.mubr.f32.gmra.mrb[46].mxu1 %v535_v63  ;;  %v537_v10 = vmax.f32 %v331_v0, 0.0 }
 0x178   :  { %v538_v5 = vmax.f32 %v333_v4, 0.0  ;;  %v336_v6 = vpop.f32.mrb[12].mxu0  ;;  %v1912_v7 = vpop.f32.mrb[12].mxu1 }
 0x179   :  { %v337_v11 = vadd.f32 %v336_v6, %v1869_v17  ;;  %v338_v12 = vpop.f32.mrb[13].mxu0  ;;  %v1916_v15 = vpop.f32.mrb[13].mxu1 }
 0x17a   :  { %v339_v21 = vadd.f32 %v338_v12, %v1873_v18  ;;  %773 = vmatprep.mubr.f32.mxu1 %v538_v5  ;;  %v1544_v5 = vpack.c.bf16 %v1059_v62, %v1058_v61 }
 0x17b   :  { %774 = vmatmul.mubr.f32.gmra.mrb[48].mxu1 %v537_v10  ;;  %v539_v33 = vmax.f32 %v337_v11, 0.0  ;;  %v1060_v10 = vld [vmem:[#allocation8 + $0x60] sm:$0xff]  ;;  %v1061_v11 = vld [vmem:[#allocation8 + $0x68] sm:$0xff] }
 0x17c   :  { %v540_v25 = vmax.f32 %v339_v21, 0.0  ;;  %v342_v26 = vpop.f32.mrb[14].mxu0  ;;  %v1919_v28 = vpop.f32.mrb[14].mxu1  ;;  %1545 = vmatpush1.bf16.msra.mxu0 %v1544_v5  ;;  %v1067_v5 = vld [vmem:[#allocation8 + $0x98] sm:$0xff] }
 0x17d   :  { %v343_v34 = vadd.f32 %v342_v26, %v1869_v17  ;;  %v344_v36 = vpop.f32.mrb[15].mxu0  ;;  %v1923_v37 = vpop.f32.mrb[15].mxu1  ;;  %1546 = vmatprep.subr.bf16.mxu0 %v1744_v60 }
 0x17e   :  { %v345_v38 = vadd.f32 %v344_v36, %v1873_v18  ;;  %779 = vmatprep.mubr.f32.mxu1 %v540_v25  ;;  %v1547_v25 = vpack.c.bf16 %v1061_v11, %v1060_v10 }
 0x17f   :  { %780 = vmatmul.mubr.f32.gmra.mrb[50].mxu1 %v539_v33  ;;  %v541_v48 = vmax.f32 %v343_v34, 0.0  ;;  %v1063_v33 = vld [vmem:[#allocation8 + $0x78] sm:$0xff] }
 0x180   :  { %v542_v41 = vmax.f32 %v345_v38, 0.0  ;;  %v348_v42 = vpop.f32.mrb[16].mxu0  ;;  %v1926_v44 = vpop.f32.mrb[16].mxu1  ;;  %1548 = vmatpush1.bf16.msra.mxu0 %v1547_v25 }
 0x181   :  { %v349_v49 = vadd.f32 %v348_v42, %v1869_v17  ;;  %v350_v50 = vpop.f32.mrb[17].mxu0  ;;  %v1930_v52 = vpop.f32.mrb[17].mxu1  ;;  %v1550_v42 = vpack.c.bf16 %v1063_v33, %v1062_v32  ;;  %1549 = vmatprep.subr.bf16.mxu0 %v1744_v60 }
 0x182   :  { %v351_v53 = vadd.f32 %v350_v50, %v1873_v18  ;;  %785 = vmatprep.mubr.f32.mxu1 %v542_v41  ;;  %v1065_v50 = vld [vmem:[#allocation8 + $0x88] sm:$0xff] }
 0x183   :  { %786 = vmatmul.mubr.f32.gmra.mrb[52].mxu1 %v541_v48  ;;  %v543_v63 = vmax.f32 %v349_v49, 0.0  ;;  %v1064_v49 = vld [vmem:[#allocation8 + $0x80] sm:$0xff] }
 0x184   :  { %v544_v56 = vmax.f32 %v351_v53, 0.0  ;;  %v354_v57 = vpop.f32.mrb[18].mxu0  ;;  %v1933_v58 = vpop.f32.mrb[18].mxu1  ;;  %1551 = vmatpush1.bf16.msra.mxu0 %v1550_v42  ;;  %v1553_v62 = vpack.c.bf16 %v1065_v50, %v1064_v49  ;;  %v1070_v49 = vld [vmem:[#allocation8 + $0xb0] sm:$0xff]  ;;  %v1071_v50 = vld [vmem:[#allocation8 + $0xb8] sm:$0xff] }
 0x185   :  { %v355_v0 = vadd.f32 %v354_v57, %v1869_v17  ;;  %v356_v1 = vpop.f32.mrb[19].mxu0  ;;  %v1937_v3 = vpop.f32.mrb[19].mxu1  ;;  %1552 = vmatprep.subr.bf16.mxu0 %v1744_v60 }
 0x186   :  { %v357_v4 = vadd.f32 %v356_v1, %v1873_v18  ;;  %791 = vmatprep.mubr.f32.mxu1 %v544_v56 }
 0x187   :  { %792 = vmatmul.mubr.f32.gmra.mrb[54].mxu1 %v543_v63  ;;  %v545_v12 = vmax.f32 %v355_v0, 0.0 }
 0x188   :  { %v546_v6 = vmax.f32 %v357_v4, 0.0  ;;  %v360_v8 = vpop.f32.mrb[20].mxu0  ;;  %v1940_v9 = vpop.f32.mrb[20].mxu1  ;;  %v1066_v4 = vld [vmem:[#allocation8 + $0x90] sm:$0xff]  ;;  %1554 = vmatpush1.bf16.msra.mxu0 %v1553_v62 }
 0x189   :  { %v361_v19 = vadd.f32 %v360_v8, %v1869_v17  ;;  %v362_v21 = vpop.f32.mrb[21].mxu0  ;;  %v1944_v22 = vpop.f32.mrb[21].mxu1  ;;  %1555 = vmatprep.subr.bf16.mxu0 %v1744_v60 }
 0x18a   :  { %v363_v24 = vadd.f32 %v362_v21, %v1873_v18  ;;  %797 = vmatprep.mubr.f32.mxu1 %v546_v6 }
 0x18b   :  { %798 = vmatmul.mubr.f32.gmra.mrb[56].mxu1 %v545_v12  ;;  %v547_v34 = vmax.f32 %v361_v19, 0.0  ;;  %v1556_v19 = vpack.c.bf16 %v1067_v5, %v1066_v4 }
 0x18c   :  { %v548_v26 = vmax.f32 %v363_v24, 0.0  ;;  %v366_v29 = vpop.f32.mrb[22].mxu0  ;;  %v1947_v30 = vpop.f32.mrb[22].mxu1 }
 0x18d   :  { %v367_v36 = vadd.f32 %v366_v29, %v1869_v17  ;;  %v368_v38 = vpop.f32.mrb[23].mxu0  ;;  %v1951_v40 = vpop.f32.mrb[23].mxu1  ;;  %v1069_v29 = vld [vmem:[#allocation8 + $0xa8] sm:$0xff]  ;;  %1557 = vmatpush1.bf16.msra.mxu0 %v1556_v19 }
 0x18e   :  { %v369_v41 = vadd.f32 %v368_v38, %v1873_v18  ;;  %803 = vmatprep.mubr.f32.mxu1 %v548_v26  ;;  %v1068_v26 = vld [vmem:[#allocation8 + $0xa0] sm:$0xff]  ;;  %1558 = vmatprep.subr.bf16.mxu0 %v1744_v60 }
 0x18f   :  { %804 = vmatmul.mubr.f32.gmra.mrb[58].mxu1 %v547_v34  ;;  %v549_v53 = vmax.f32 %v367_v36, 0.0 }
 0x190   :  { %v550_v45 = vmax.f32 %v369_v41, 0.0  ;;  %v372_v46 = vpop.f32.mrb[24].mxu0  ;;  %v1954_v48 = vpop.f32.mrb[24].mxu1  ;;  %v1559_v41 = vpack.c.bf16 %v1069_v29, %v1068_v26 }
 0x191   :  { %v373_v54 = vadd.f32 %v372_v46, %v1869_v17  ;;  %v374_v56 = vpop.f32.mrb[25].mxu0  ;;  %v1958_v57 = vpop.f32.mrb[25].mxu1 }
 0x192   :  { %v375_v61 = vadd.f32 %v374_v56, %v1873_v18  ;;  %809 = vmatprep.mubr.f32.mxu1 %v550_v45  ;;  %1560 = vmatpush1.bf16.msra.mxu0 %v1559_v41 }
 0x193   :  { %810 = vmatmul.mubr.f32.gmra.mrb[60].mxu1 %v549_v53  ;;  %v551_v6 = vmax.f32 %v373_v54, 0.0  ;;  %1561 = vmatprep.subr.bf16.mxu0 %v1744_v60 }
 0x194   :  { %v552_v63 = vmax.f32 %v375_v61, 0.0  ;;  %v378_v0 = vpop.f32.mrb[26].mxu0  ;;  %v1961_v1 = vpop.f32.mrb[26].mxu1 }
 0x195   :  { %v379_v8 = vadd.f32 %v378_v0, %v1869_v17  ;;  %v380_v10 = vpop.f32.mrb[27].mxu0  ;;  %v1965_v11 = vpop.f32.mrb[27].mxu1 }
 0x196   :  { %v381_v12 = vadd.f32 %v380_v10, %v1873_v18  ;;  %815 = vmatprep.mubr.f32.mxu1 %v552_v63  ;;  %v1562_v63 = vpack.c.bf16 %v1071_v50, %v1070_v49 }
 0x197   :  { %816 = vmatmul.mubr.f32.gmra.mrb[62].mxu1 %v551_v6  ;;  %v553_v32 = vmax.f32 %v379_v8, 0.0  ;;  %v1072_v6 = vld [vmem:[#allocation8 + $0xc0] sm:$0xff]  ;;  %v1073_v8 = vld [vmem:[#allocation8 + $0xc8] sm:$0xff] }
 0x198   :  { %v554_v21 = vmax.f32 %v381_v12, 0.0  ;;  %v384_v24 = vpop.f32.mrb[28].mxu0  ;;  %v1968_v25 = vpop.f32.mrb[28].mxu1  ;;  %1563 = vmatpush1.bf16.msra.mxu0 %v1562_v63  ;;  %v1565_v26 = vpack.c.bf16 %v1073_v8, %v1072_v6 }
 0x199   :  { %v385_v33 = vadd.f32 %v384_v24, %v1869_v17  ;;  %v386_v34 = vpop.f32.mrb[29].mxu0  ;;  %v1972_v36 = vpop.f32.mrb[29].mxu1  ;;  %1564 = vmatprep.subr.bf16.mxu0 %v1744_v60 }
 0x19a   :  { %v387_v38 = vadd.f32 %v386_v34, %v1873_v18  ;;  %821 = vmatprep.mubr.f32.mxu1 %v554_v21  ;;  %v1074_v34 = vld [vmem:[#allocation8 + $0xd0] sm:$0xff] }
 0x19b   :  { %822 = vmatmul.mubr.f32.gmra.mrb[64].mxu1 %v553_v32  ;;  %v555_v53 = vmax.f32 %v385_v33, 0.0 }
 0x19c   :  { %v556_v42 = vmax.f32 %v387_v38, 0.0  ;;  %v390_v45 = vpop.f32.mrb[30].mxu0  ;;  %v1975_v46 = vpop.f32.mrb[30].mxu1  ;;  %v1075_v38 = vld [vmem:[#allocation8 + $0xd8] sm:$0xff]  ;;  %1566 = vmatpush1.bf16.msra.mxu0 %v1565_v26 }
 0x19d   :  { %v391_v54 = vadd.f32 %v390_v45, %v1869_v17  ;;  %v392_v56 = vpop.f32.mrb[31].mxu0  ;;  %v1979_v61 = vpop.f32.mrb[31].mxu1  ;;  %1567 = vmatprep.subr.bf16.mxu0 %v1744_v60 }
 0x19e   :  { %v393_v62 = vadd.f32 %v392_v56, %v1873_v18  ;;  %827 = vmatprep.mubr.f32.mxu1 %v556_v42 }
 0x19f   :  { %828 = vmatmul.mubr.f32.gmra.mrb[66].mxu1 %v555_v53  ;;  %v557_v10 = vmax.f32 %v391_v54, 0.0  ;;  %v1568_v53 = vpack.c.bf16 %v1075_v38, %v1074_v34  ;;  %v415_v34 = vadd.f32 %v1875_v20, %v1869_v17  ;;  %v435_v20 = vadd.f32 %v1896_v47, %v1873_v18 }
 0x1a0   :  { %v558_v0 = vmax.f32 %v393_v62, 0.0  ;;  %v396_v4 = vpop.f32.mrb[32].mxu0  ;;  %v1982_v5 = vpop.f32.mrb[32].mxu1  ;;  %v417_v62 = vadd.f32 %v1878_v23, %v1873_v18  ;;  %v447_v47 = vadd.f32 %v1909_v2, %v1873_v18  ;;  %v459_v2 = vadd.f32 %v1923_v37, %v1873_v18 }
 0x1a1   :  { %v397_v12 = vadd.f32 %v396_v4, %v1869_v17  ;;  %v398_v19 = vpop.f32.mrb[33].mxu0  ;;  %v1986_v21 = vpop.f32.mrb[33].mxu1  ;;  %v1077_v4 = vld [vmem:[#allocation8 + $0xe8] sm:$0xff]  ;;  %1569 = vmatpush1.bf16.msra.mxu0 %v1568_v53  ;;  %v427_v53 = vadd.f32 %v1887_v35, %v1869_v17  ;;  %v471_v37 = vadd.f32 %v1937_v3, %v1873_v18  ;;  %v483_v3 = vadd.f32 %v1951_v40, %v1873_v18 }
 0x1a2   :  { %v399_v24 = vadd.f32 %v398_v19, %v1873_v18  ;;  %833 = vmatprep.mubr.f32.mxu1 %v558_v0  ;;  %v1076_v0 = vld [vmem:[#allocation8 + $0xe0] sm:$0xff]  ;;  %v566_v23 = vmax.f32 %v417_v62, 0.0  ;;  %1570 = vmatprep.subr.bf16.mxu0 %v1744_v60  ;;  %v1079_v62 = vld [vmem:[#allocation8 + $0xf8] sm:$0xff]  ;;  %v495_v40 = vadd.f32 %v1965_v11, %v1873_v18  ;;  %v507_v11 = vadd.f32 %v1979_v61, %v1873_v18 }
 0x1a3   :  { %834 = vmatmul.mubr.f32.gmra.mrb[68].mxu1 %v557_v10  ;;  %v559_v41 = vmax.f32 %v397_v12, 0.0 }
 0x1a4   :  { %v560_v29 = vmax.f32 %v399_v24, 0.0  ;;  %v402_v32 = vpop.f32.mrb[34].mxu0  ;;  %v1989_v33 = vpop.f32.mrb[34].mxu1  ;;  %v1571_v24 = vpack.c.bf16 %v1077_v4, %v1076_v0 }
 0x1a5   :  { %v403_v42 = vadd.f32 %v402_v32, %v1869_v17  ;;  %v404_v45 = vpop.f32.mrb[35].mxu0  ;;  %v1993_v49 = vpop.f32.mrb[35].mxu1 }
 0x1a6   :  { %v405_v50 = vadd.f32 %v404_v45, %v1873_v18  ;;  %839 = vmatprep.mubr.f32.mxu1 %v560_v29  ;;  %v423_v29 = vadd.f32 %v1884_v31, %v1873_v18  ;;  %1572 = vmatpush1.bf16.msra.mxu0 %v1571_v24  ;;  %v421_v31 = vadd.f32 %v1881_v27, %v1869_v17 }
 0x1a7   :  { %840 = vmatmul.mubr.f32.gmra.mrb[70].mxu1 %v559_v41  ;;  %v561_v6 = vmax.f32 %v403_v42, 0.0  ;;  %v429_v41 = vadd.f32 %v1890_v39, %v1873_v18  ;;  %1573 = vmatprep.subr.bf16.mxu0 %v1744_v60  ;;  %v565_v42 = vmax.f32 %v415_v34, 0.0  ;;  %v441_v39 = vadd.f32 %v1902_v55, %v1873_v18 }
 0x1a8   :  { %v562_v54 = vmax.f32 %v405_v50, 0.0  ;;  %v408_v56 = vpop.f32.mrb[36].mxu0  ;;  %v1998_v63 = vpop.f32.mrb[36].mxu1  ;;  %v568_v38 = vmax.f32 %v423_v29, 0.0  ;;  %v567_v50 = vmax.f32 %v421_v31, 0.0  ;;  %v569_v60 = vmax.f32 %v427_v53, 0.0 }
 0x1a9   :  { %v409_v8 = vadd.f32 %v408_v56, %v1869_v17  ;;  %v410_v10 = vpop.f32.mrb[37].mxu0  ;;  %v2002_v12 = vpop.f32.mrb[37].mxu1  ;;  %v570_v45 = vmax.f32 %v429_v41, 0.0  ;;  %v433_v27 = vadd.f32 %v1893_v43, %v1869_v17  ;;  %v1078_v56 = vld [vmem:[#allocation8 + $0xf0] sm:$0xff]  ;;  %v574_v0 = vmax.f32 %v441_v39, 0.0 }
 0x1aa   :  { %v411_v19 = vadd.f32 %v410_v10, %v1873_v18  ;;  %845 = vmatprep.mubr.f32.mxu1 %v562_v54  ;;  %v572_v54 = vmax.f32 %v435_v20, 0.0  ;;  %v1574_v4 = vpack.c.bf16 %v1079_v62, %v1078_v56  ;;  %v576_v55 = vmax.f32 %v447_v47, 0.0 }
 0x1ab   :  { %846 = vmatmul.mubr.f32.gmra.mrb[72].mxu1 %v561_v6  ;;  %v563_v32 = vmax.f32 %v409_v8, 0.0  ;;  %v571_v35 = vmax.f32 %v433_v27, 0.0  ;;  %v439_v6 = vadd.f32 %v1899_v51, %v1869_v17  ;;  %v453_v43 = vadd.f32 %v1916_v15, %v1873_v18 }
 0x1ac   :  { %v564_v26 = vmax.f32 %v411_v19, 0.0  ;;  %1575 = vmatpush1.bf16.msra.mxu0 %v1574_v4  ;;  %v445_v10 = vadd.f32 %v1905_v59, %v1869_v17  ;;  %v451_v51 = vadd.f32 %v1912_v7, %v1869_v17  ;;  %v465_v15 = vadd.f32 %v1930_v52, %v1873_v18 }
 0x1ad   :  { %v573_v8 = vmax.f32 %v439_v6, 0.0  ;;  %v578_v19 = vmax.f32 %v453_v43, 0.0  ;;  %v457_v59 = vadd.f32 %v1919_v28, %v1869_v17  ;;  %v463_v7 = vadd.f32 %v1926_v44, %v1869_v17 }
 0x1ae   :  { %851 = vmatprep.mubr.f32.mxu1 %v564_v26  ;;  %v575_v24 = vmax.f32 %v445_v10, 0.0  ;;  %v580_v26 = vmax.f32 %v459_v2, 0.0  ;;  %v582_v29 = vmax.f32 %v465_v15, 0.0  ;;  %v584_v34 = vmax.f32 %v471_v37, 0.0 }
 0x1af   :  { %852 = vmatmul.mubr.f32.gmra.mrb[74].mxu1 %v563_v32  ;;  %v579_v32 = vmax.f32 %v457_v59, 0.0  ;;  %v477_v52 = vadd.f32 %v1944_v22, %v1873_v18  ;;  %v469_v28 = vadd.f32 %v1933_v58, %v1869_v17  ;;  %v475_v44 = vadd.f32 %v1940_v9, %v1869_v17 }
 0x1b0   :  { %857 = vmatprep.mubr.f32.mxu1 %v566_v23  ;;  %v577_v23 = vmax.f32 %v451_v51, 0.0  ;;  %v588_v31 = vmax.f32 %v483_v3, 0.0  ;;  %v489_v22 = vadd.f32 %v1958_v57, %v1873_v18  ;;  %v481_v58 = vadd.f32 %v1947_v30, %v1869_v17 }
 0x1b1   :  { %v586_v41 = vmax.f32 %v477_v52, 0.0  ;;  %v487_v9 = vadd.f32 %v1954_v48, %v1869_v17  ;;  %v592_v53 = vmax.f32 %v495_v40, 0.0  ;;  %v501_v57 = vadd.f32 %v1972_v36, %v1873_v18 }
 0x1b2   :  { %v590_v20 = vmax.f32 %v489_v22, 0.0  ;;  %v493_v30 = vadd.f32 %v1961_v1, %v1869_v17  ;;  %v499_v48 = vadd.f32 %v1968_v25, %v1869_v17  ;;  %v596_v27 = vmax.f32 %v507_v11, 0.0 }
 0x1b3   :  { %858 = vmatmul.mubr.f32.gmra.mrb[76].mxu1 %v565_v42  ;;  %v583_v42 = vmax.f32 %v469_v28, 0.0  ;;  %v594_v39 = vmax.f32 %v501_v57, 0.0  ;;  %v513_v36 = vadd.f32 %v1986_v21, %v1873_v18  ;;  %v505_v1 = vadd.f32 %v1975_v46, %v1869_v17 }
 0x1b4   :  { %863 = vmatprep.mubr.f32.mxu1 %v568_v38  ;;  %v581_v38 = vmax.f32 %v463_v7, 0.0  ;;  %v593_v56 = vmax.f32 %v499_v48, 0.0  ;;  %v519_v61 = vadd.f32 %v1993_v49, %v1873_v18  ;;  %v511_v25 = vadd.f32 %v1982_v5, %v1869_v17 }
 0x1b5   :  { %v598_v62 = vmax.f32 %v513_v36, 0.0  ;;  %v525_v21 = vadd.f32 %v2002_v12, %v1873_v18  ;;  %v517_v46 = vadd.f32 %v1989_v33, %v1869_v17  ;;  %v523_v49 = vadd.f32 %v1998_v63, %v1869_v17 }
 0x1b6   :  { %v600_v47 = vmax.f32 %v519_v61, 0.0  ;;  %v597_v4 = vmax.f32 %v511_v25, 0.0 }
 0x1b7   :  { %864 = vmatmul.mubr.f32.gmra.mrb[78].mxu1 %v567_v50  ;;  %v587_v50 = vmax.f32 %v481_v58, 0.0  ;;  %v599_v6 = vmax.f32 %v517_v46, 0.0  ;;  %v601_v5 = vmax.f32 %v523_v49, 0.0 }
 0x1b8   :  { %869 = vmatprep.mubr.f32.mxu1 %v570_v45  ;;  %v585_v45 = vmax.f32 %v475_v44, 0.0 }
 0x1bb   :  { %870 = vmatmul.mubr.f32.gmra.mrb[80].mxu1 %v569_v60  ;;  %v591_v60 = vmax.f32 %v493_v30, 0.0 }
 0x1bc   :  { %875 = vmatprep.mubr.f32.mxu1 %v572_v54  ;;  %v589_v54 = vmax.f32 %v487_v9, 0.0 }
 0x1bf   :  { %876 = vmatmul.mubr.f32.gmra.mrb[82].mxu1 %v571_v35  ;;  %v602_v35 = vmax.f32 %v525_v21, 0.0 }
 0x1c0   :  { %881 = vmatprep.mubr.f32.mxu1 %v574_v0  ;;  %v595_v0 = vmax.f32 %v505_v1, 0.0 }
 0x1c3   :  { %882 = vmatmul.mubr.f32.gmra.mrb[84].mxu1 %v573_v8 }
 0x1c4   :  { %887 = vmatprep.mubr.f32.mxu1 %v576_v55  ;;  %v667_v55 = vld [vmem:[%s2230_s4] sm:$0x3] }
 0x1c5   :  { %v2086_v18 = vrot.slane %v667_v55, %v226_v14  ;;  %v2090_v33 = vrot.slane %v667_v55, %v230_v16 }
 0x1c7   :  { %888 = vmatmul.mubr.f32.gmra.mrb[86].mxu1 %v575_v24 }
 0x1c8   :  { %893 = vmatprep.mubr.f32.mxu1 %v578_v19 }
 0x1cb   :  { %894 = vmatmul.mubr.f32.gmra.mrb[88].mxu1 %v577_v23 }
 0x1cc   :  { %899 = vmatprep.mubr.f32.mxu1 %v580_v26 }
 0x1cf   :  { %900 = vmatmul.mubr.f32.gmra.mrb[90].mxu1 %v579_v32 }
 0x1d0   :  { %905 = vmatprep.mubr.f32.mxu1 %v582_v29 }
 0x1d3   :  { %906 = vmatmul.mubr.f32.gmra.mrb[92].mxu1 %v581_v38 }
 0x1d4   :  { %911 = vmatprep.mubr.f32.mxu1 %v584_v34 }
 0x1d7   :  { %912 = vmatmul.mubr.f32.gmra.mrb[94].mxu1 %v583_v42 }
 0x1d8   :  { %917 = vmatprep.mubr.f32.mxu1 %v586_v41 }
 0x1db   :  { %918 = vmatmul.mubr.f32.gmra.mrb[96].mxu1 %v585_v45 }
 0x1dc   :  { %923 = vmatprep.mubr.f32.mxu1 %v588_v31 }
 0x1df   :  { %924 = vmatmul.mubr.f32.gmra.mrb[98].mxu1 %v587_v50 }
 0x1e0   :  { %929 = vmatprep.mubr.f32.mxu1 %v590_v20 }
 0x1e3   :  { %930 = vmatmul.mubr.f32.gmra.mrb[100].mxu1 %v589_v54 }
 0x1e4   :  { %935 = vmatprep.mubr.f32.mxu1 %v592_v53 }
 0x1e7   :  { %936 = vmatmul.mubr.f32.gmra.mrb[102].mxu1 %v591_v60 }
 0x1e8   :  { %941 = vmatprep.mubr.f32.mxu1 %v594_v39 }
 0x1eb   :  { %942 = vmatmul.mubr.f32.gmra.mrb[104].mxu1 %v593_v56 }
 0x1ec   :  { %947 = vmatprep.mubr.f32.mxu1 %v596_v27 }
 0x1ef   :  { %948 = vmatmul.mubr.f32.gmra.mrb[106].mxu1 %v595_v0 }
 0x1f0   :  { %953 = vmatprep.mubr.f32.mxu1 %v598_v62 }
 0x1f3   :  { %954 = vmatmul.mubr.f32.gmra.mrb[108].mxu1 %v597_v4 }
 0x1f4   :  { %959 = vmatprep.mubr.f32.mxu1 %v600_v47 }
 0x1f7   :  { %960 = vmatmul.mubr.f32.gmra.mrb[110].mxu1 %v599_v6 }
 0x1f8   :  { %965 = vmatprep.mubr.f32.mxu1 %v602_v35 }
 0x1fb   :  { %966 = vmatmul.mubr.f32.gmra.mrb[112].mxu1 %v601_v5 }
 0x23a   :  { %v745_v12 = vpop.f32.mrb[38].mxu1 }
 0x23b   :  { %v746_v43 = vadd.f32 %v745_v12, %v2086_v18  ;;  %v747_v17 = vpop.f32.mrb[39].mxu1 }
 0x23c   :  { %v748_v63 = vadd.f32 %v747_v17, %v2090_v33 }
 0x23d   :  { %v972_v19 = vmax.f32 %v746_v43, 0.0 }
 0x23e   :  { %v973_v8 = vmax.f32 %v748_v63, 0.0  ;;  %v751_v10 = vpop.f32.mrb[40].mxu1 }
 0x23f   :  { %v752_v2 = vadd.f32 %v751_v10, %v2086_v18  ;;  %v753_v24 = vpop.f32.mrb[41].mxu1 }
 0x240   :  { %v754_v51 = vadd.f32 %v753_v24, %v2090_v33  ;;  %1151 = vmatprep.mubr.f32.mxu0 %v973_v8 }
 0x241   :  { %1152 = vmatmul.mubr.f32.vlgmr.msra.gmra.mrb[38].mxu0 %v972_v19  ;;  %v974_v16 = vmax.f32 %v752_v2, 0.0 }
 0x242   :  { %v975_v14 = vmax.f32 %v754_v51, 0.0  ;;  %v757_v13 = vpop.f32.mrb[42].mxu1 }
 0x243   :  { %v758_v26 = vadd.f32 %v757_v13, %v2086_v18  ;;  %v759_v15 = vpop.f32.mrb[43].mxu1 }
 0x244   :  { %v760_v23 = vadd.f32 %v759_v15, %v2090_v33  ;;  %1156 = vmatprep.mubr.f32.mxu0 %v975_v14 }
 0x245   :  { %1157 = vmatmul.mubr.f32.gmra.mrb[40].mxu0 %v974_v16  ;;  %v976_v37 = vmax.f32 %v758_v26, 0.0 }
 0x246   :  { %v977_v59 = vmax.f32 %v760_v23, 0.0  ;;  %v763_v29 = vpop.f32.mrb[44].mxu1 }
 0x247   :  { %v764_v32 = vadd.f32 %v763_v29, %v2086_v18  ;;  %v765_v7 = vpop.f32.mrb[45].mxu1 }
 0x248   :  { %v766_v34 = vadd.f32 %v765_v7, %v2090_v33  ;;  %1161 = vmatprep.mubr.f32.mxu0 %v977_v59 }
 0x249   :  { %1162 = vmatmul.mubr.f32.gmra.mrb[42].mxu0 %v976_v37  ;;  %v978_v28 = vmax.f32 %v764_v32, 0.0 }
 0x24a   :  { %v979_v52 = vmax.f32 %v766_v34, 0.0  ;;  %v769_v38 = vpop.f32.mrb[46].mxu1 }
 0x24b   :  { %v770_v41 = vadd.f32 %v769_v38, %v2086_v18  ;;  %v771_v3 = vpop.f32.mrb[47].mxu1 }
 0x24c   :  { %v772_v42 = vadd.f32 %v771_v3, %v2090_v33  ;;  %1166 = vmatprep.mubr.f32.mxu0 %v979_v52 }
 0x24d   :  { %1167 = vmatmul.mubr.f32.gmra.mrb[44].mxu0 %v978_v28  ;;  %v980_v22 = vmax.f32 %v770_v41, 0.0 }
 0x24e   :  { %v981_v44 = vmax.f32 %v772_v42, 0.0  ;;  %v775_v31 = vpop.f32.mrb[48].mxu1 }
 0x24f   :  { %v776_v45 = vadd.f32 %v775_v31, %v2086_v18  ;;  %v777_v58 = vpop.f32.mrb[49].mxu1 }
 0x250   :  { %v778_v20 = vadd.f32 %v777_v58, %v2090_v33  ;;  %1171 = vmatprep.mubr.f32.mxu0 %v981_v44 }
 0x251   :  { %1172 = vmatmul.mubr.f32.gmra.mrb[46].mxu0 %v980_v22  ;;  %v982_v9 = vmax.f32 %v776_v45, 0.0 }
 0x252   :  { %v983_v40 = vmax.f32 %v778_v20, 0.0  ;;  %v781_v50 = vpop.f32.mrb[50].mxu1 }
 0x253   :  { %v782_v53 = vadd.f32 %v781_v50, %v2086_v18  ;;  %v783_v57 = vpop.f32.mrb[51].mxu1 }
 0x254   :  { %v784_v54 = vadd.f32 %v783_v57, %v2090_v33  ;;  %1176 = vmatprep.mubr.f32.mxu0 %v983_v40 }
 0x255   :  { %1177 = vmatmul.mubr.f32.gmra.mrb[48].mxu0 %v982_v9  ;;  %v984_v11 = vmax.f32 %v782_v53, 0.0 }
 0x256   :  { %v985_v30 = vmax.f32 %v784_v54, 0.0  ;;  %v787_v39 = vpop.f32.mrb[52].mxu1 }
 0x257   :  { %v788_v60 = vadd.f32 %v787_v39, %v2086_v18  ;;  %v789_v48 = vpop.f32.mrb[53].mxu1 }
 0x258   :  { %v790_v27 = vadd.f32 %v789_v48, %v2090_v33  ;;  %1181 = vmatprep.mubr.f32.mxu0 %v985_v30 }
 0x259   :  { %1182 = vmatmul.mubr.f32.gmra.mrb[50].mxu0 %v984_v11  ;;  %v986_v1 = vmax.f32 %v788_v60, 0.0 }
 0x25a   :  { %v987_v36 = vmax.f32 %v790_v27, 0.0  ;;  %v793_v56 = vpop.f32.mrb[54].mxu1 }
 0x25b   :  { %v794_v62 = vadd.f32 %v793_v56, %v2086_v18  ;;  %v795_v61 = vpop.f32.mrb[55].mxu1 }
 0x25c   :  { %v796_v0 = vadd.f32 %v795_v61, %v2090_v33  ;;  %1186 = vmatprep.mubr.f32.mxu0 %v987_v36 }
 0x25d   :  { %1187 = vmatmul.mubr.f32.gmra.mrb[52].mxu0 %v986_v1  ;;  %v988_v21 = vmax.f32 %v794_v62, 0.0 }
 0x25e   :  { %v989_v25 = vmax.f32 %v796_v0, 0.0  ;;  %v799_v47 = vpop.f32.mrb[56].mxu1 }
 0x25f   :  { %v800_v4 = vadd.f32 %v799_v47, %v2086_v18  ;;  %v801_v46 = vpop.f32.mrb[57].mxu1 }
 0x260   :  { %v802_v35 = vadd.f32 %v801_v46, %v2090_v33  ;;  %1191 = vmatprep.mubr.f32.mxu0 %v989_v25 }
 0x261   :  { %1192 = vmatmul.mubr.f32.gmra.mrb[54].mxu0 %v988_v21  ;;  %v990_v5 = vmax.f32 %v800_v4, 0.0 }
 0x262   :  { %v991_v6 = vmax.f32 %v802_v35, 0.0  ;;  %v805_v49 = vpop.f32.mrb[58].mxu1 }
 0x263   :  { %v806_v55 = vadd.f32 %v805_v49, %v2086_v18  ;;  %v807_v12 = vpop.f32.mrb[59].mxu1 }
 0x264   :  { %v808_v43 = vadd.f32 %v807_v12, %v2090_v33  ;;  %1196 = vmatprep.mubr.f32.mxu0 %v991_v6 }
 0x265   :  { %1197 = vmatmul.mubr.f32.gmra.mrb[56].mxu0 %v990_v5  ;;  %v992_v8 = vmax.f32 %v806_v55, 0.0 }
 0x266   :  { %v993_v17 = vmax.f32 %v808_v43, 0.0  ;;  %v811_v63 = vpop.f32.mrb[60].mxu1 }
 0x267   :  { %v812_v10 = vadd.f32 %v811_v63, %v2086_v18  ;;  %v813_v19 = vpop.f32.mrb[61].mxu1 }
 0x268   :  { %v814_v2 = vadd.f32 %v813_v19, %v2090_v33  ;;  %1201 = vmatprep.mubr.f32.mxu0 %v993_v17 }
 0x269   :  { %1202 = vmatmul.mubr.f32.gmra.mrb[58].mxu0 %v992_v8  ;;  %v994_v14 = vmax.f32 %v812_v10, 0.0 }
 0x26a   :  { %v995_v24 = vmax.f32 %v814_v2, 0.0  ;;  %v817_v51 = vpop.f32.mrb[62].mxu1 }
 0x26b   :  { %v818_v13 = vadd.f32 %v817_v51, %v2086_v18  ;;  %v819_v16 = vpop.f32.mrb[63].mxu1 }
 0x26c   :  { %v820_v26 = vadd.f32 %v819_v16, %v2090_v33  ;;  %1206 = vmatprep.mubr.f32.mxu0 %v995_v24 }
 0x26d   :  { %1207 = vmatmul.mubr.f32.gmra.mrb[60].mxu0 %v994_v14  ;;  %v996_v59 = vmax.f32 %v818_v13, 0.0 }
 0x26e   :  { %v997_v15 = vmax.f32 %v820_v26, 0.0  ;;  %v823_v23 = vpop.f32.mrb[64].mxu1 }
 0x26f   :  { %v824_v29 = vadd.f32 %v823_v23, %v2086_v18  ;;  %v825_v37 = vpop.f32.mrb[65].mxu1 }
 0x270   :  { %v826_v32 = vadd.f32 %v825_v37, %v2090_v33  ;;  %1211 = vmatprep.mubr.f32.mxu0 %v997_v15 }
 0x271   :  { %1212 = vmatmul.mubr.f32.gmra.mrb[62].mxu0 %v996_v59  ;;  %v998_v52 = vmax.f32 %v824_v29, 0.0 }
 0x272   :  { %v999_v7 = vmax.f32 %v826_v32, 0.0  ;;  %v829_v34 = vpop.f32.mrb[66].mxu1 }
 0x273   :  { %v830_v38 = vadd.f32 %v829_v34, %v2086_v18  ;;  %v831_v28 = vpop.f32.mrb[67].mxu1 }
 0x274   :  { %v832_v41 = vadd.f32 %v831_v28, %v2090_v33  ;;  %1216 = vmatprep.mubr.f32.mxu0 %v999_v7 }
 0x275   :  { %1217 = vmatmul.mubr.f32.gmra.mrb[64].mxu0 %v998_v52  ;;  %v1000_v44 = vmax.f32 %v830_v38, 0.0 }
 0x276   :  { %v1001_v3 = vmax.f32 %v832_v41, 0.0  ;;  %v835_v42 = vpop.f32.mrb[68].mxu1 }
 0x277   :  { %v836_v31 = vadd.f32 %v835_v42, %v2086_v18  ;;  %v837_v22 = vpop.f32.mrb[69].mxu1 }
 0x278   :  { %v838_v45 = vadd.f32 %v837_v22, %v2090_v33  ;;  %1221 = vmatprep.mubr.f32.mxu0 %v1001_v3 }
 0x279   :  { %1222 = vmatmul.mubr.f32.gmra.mrb[66].mxu0 %v1000_v44  ;;  %v1002_v40 = vmax.f32 %v836_v31, 0.0 }
 0x27a   :  { %v1003_v58 = vmax.f32 %v838_v45, 0.0  ;;  %v841_v20 = vpop.f32.mrb[70].mxu1 }
 0x27b   :  { %v842_v50 = vadd.f32 %v841_v20, %v2086_v18  ;;  %v843_v9 = vpop.f32.mrb[71].mxu1 }
 0x27c   :  { %v844_v53 = vadd.f32 %v843_v9, %v2090_v33  ;;  %1226 = vmatprep.mubr.f32.mxu0 %v1003_v58 }
 0x27d   :  { %1227 = vmatmul.mubr.f32.gmra.mrb[68].mxu0 %v1002_v40  ;;  %v1004_v30 = vmax.f32 %v842_v50, 0.0 }
 0x27e   :  { %v1005_v57 = vmax.f32 %v844_v53, 0.0  ;;  %v847_v54 = vpop.f32.mrb[72].mxu1 }
 0x27f   :  { %v848_v39 = vadd.f32 %v847_v54, %v2086_v18  ;;  %v849_v11 = vpop.f32.mrb[73].mxu1 }
 0x280   :  { %v850_v60 = vadd.f32 %v849_v11, %v2090_v33  ;;  %1231 = vmatprep.mubr.f32.mxu0 %v1005_v57 }
 0x281   :  { %1232 = vmatmul.mubr.f32.gmra.mrb[70].mxu0 %v1004_v30  ;;  %v1006_v36 = vmax.f32 %v848_v39, 0.0 }
 0x282   :  { %v1007_v48 = vmax.f32 %v850_v60, 0.0  ;;  %v853_v27 = vpop.f32.mrb[74].mxu1 }
 0x283   :  { %v854_v56 = vadd.f32 %v853_v27, %v2086_v18  ;;  %v855_v1 = vpop.f32.mrb[75].mxu1 }
 0x284   :  { %v856_v62 = vadd.f32 %v855_v1, %v2090_v33  ;;  %1236 = vmatprep.mubr.f32.mxu0 %v1007_v48 }
 0x285   :  { %1237 = vmatmul.mubr.f32.gmra.mrb[72].mxu0 %v1006_v36  ;;  %v1008_v25 = vmax.f32 %v854_v56, 0.0 }
 0x286   :  { %v1009_v61 = vmax.f32 %v856_v62, 0.0  ;;  %v859_v0 = vpop.f32.mrb[76].mxu1 }
 0x287   :  { %v860_v47 = vadd.f32 %v859_v0, %v2086_v18  ;;  %v861_v21 = vpop.f32.mrb[77].mxu1 }
 0x288   :  { %v862_v4 = vadd.f32 %v861_v21, %v2090_v33  ;;  %1241 = vmatprep.mubr.f32.mxu0 %v1009_v61 }
 0x289   :  { %1242 = vmatmul.mubr.f32.gmra.mrb[74].mxu0 %v1008_v25  ;;  %v1010_v6 = vmax.f32 %v860_v47, 0.0 }
 0x28a   :  { %v1011_v46 = vmax.f32 %v862_v4, 0.0  ;;  %v865_v35 = vpop.f32.mrb[78].mxu1 }
 0x28b   :  { %v866_v49 = vadd.f32 %v865_v35, %v2086_v18  ;;  %v867_v5 = vpop.f32.mrb[79].mxu1 }
 0x28c   :  { %v868_v55 = vadd.f32 %v867_v5, %v2090_v33  ;;  %1246 = vmatprep.mubr.f32.mxu0 %v1011_v46 }
 0x28d   :  { %1247 = vmatmul.mubr.f32.gmra.mrb[76].mxu0 %v1010_v6  ;;  %v1012_v17 = vmax.f32 %v866_v49, 0.0 }
 0x28e   :  { %v1013_v12 = vmax.f32 %v868_v55, 0.0  ;;  %v871_v43 = vpop.f32.mrb[80].mxu1 }
 0x28f   :  { %v872_v63 = vadd.f32 %v871_v43, %v2086_v18  ;;  %v873_v8 = vpop.f32.mrb[81].mxu1 }
 0x290   :  { %v874_v10 = vadd.f32 %v873_v8, %v2090_v33  ;;  %1251 = vmatprep.mubr.f32.mxu0 %v1013_v12 }
 0x291   :  { %1252 = vmatmul.mubr.f32.gmra.mrb[78].mxu0 %v1012_v17  ;;  %v1014_v24 = vmax.f32 %v872_v63, 0.0 }
 0x292   :  { %v1015_v19 = vmax.f32 %v874_v10, 0.0  ;;  %v877_v2 = vpop.f32.mrb[82].mxu1 }
 0x293   :  { %v878_v51 = vadd.f32 %v877_v2, %v2086_v18  ;;  %v879_v14 = vpop.f32.mrb[83].mxu1 }
 0x294   :  { %v880_v13 = vadd.f32 %v879_v14, %v2090_v33  ;;  %1256 = vmatprep.mubr.f32.mxu0 %v1015_v19 }
 0x295   :  { %1257 = vmatmul.mubr.f32.gmra.mrb[80].mxu0 %v1014_v24  ;;  %v1016_v15 = vmax.f32 %v878_v51, 0.0 }
 0x296   :  { %v1017_v16 = vmax.f32 %v880_v13, 0.0  ;;  %v883_v26 = vpop.f32.mrb[84].mxu1 }
 0x297   :  { %v884_v23 = vadd.f32 %v883_v26, %v2086_v18  ;;  %v885_v59 = vpop.f32.mrb[85].mxu1 }
 0x298   :  { %v886_v29 = vadd.f32 %v885_v59, %v2090_v33  ;;  %1261 = vmatprep.mubr.f32.mxu0 %v1017_v16 }
 0x299   :  { %1262 = vmatmul.mubr.f32.gmra.mrb[82].mxu0 %v1016_v15  ;;  %v1018_v7 = vmax.f32 %v884_v23, 0.0 }
 0x29a   :  { %v1019_v37 = vmax.f32 %v886_v29, 0.0  ;;  %v889_v32 = vpop.f32.mrb[86].mxu1 }
 0x29b   :  { %v890_v34 = vadd.f32 %v889_v32, %v2086_v18  ;;  %v891_v52 = vpop.f32.mrb[87].mxu1 }
 0x29c   :  { %v892_v38 = vadd.f32 %v891_v52, %v2090_v33  ;;  %1266 = vmatprep.mubr.f32.mxu0 %v1019_v37 }
 0x29d   :  { %1267 = vmatmul.mubr.f32.gmra.mrb[84].mxu0 %v1018_v7  ;;  %v1020_v3 = vmax.f32 %v890_v34, 0.0 }
 0x29e   :  { %v1021_v28 = vmax.f32 %v892_v38, 0.0  ;;  %v895_v41 = vpop.f32.mrb[88].mxu1 }
 0x29f   :  { %v896_v42 = vadd.f32 %v895_v41, %v2086_v18  ;;  %v897_v44 = vpop.f32.mrb[89].mxu1 }
 0x2a0   :  { %v898_v31 = vadd.f32 %v897_v44, %v2090_v33  ;;  %1271 = vmatprep.mubr.f32.mxu0 %v1021_v28 }
 0x2a1   :  { %1272 = vmatmul.mubr.f32.gmra.mrb[86].mxu0 %v1020_v3  ;;  %v1022_v58 = vmax.f32 %v896_v42, 0.0 }
 0x2a2   :  { %v1023_v22 = vmax.f32 %v898_v31, 0.0  ;;  %v901_v45 = vpop.f32.mrb[90].mxu1 }
 0x2a3   :  { %v902_v20 = vadd.f32 %v901_v45, %v2086_v18  ;;  %v903_v40 = vpop.f32.mrb[91].mxu1 }
 0x2a4   :  { %v904_v50 = vadd.f32 %v903_v40, %v2090_v33  ;;  %1276 = vmatprep.mubr.f32.mxu0 %v1023_v22 }
 0x2a5   :  { %1277 = vmatmul.mubr.f32.gmra.mrb[88].mxu0 %v1022_v58  ;;  %v1024_v57 = vmax.f32 %v902_v20, 0.0 }
 0x2a6   :  { %v1025_v9 = vmax.f32 %v904_v50, 0.0  ;;  %v907_v53 = vpop.f32.mrb[92].mxu1 }
 0x2a7   :  { %v908_v54 = vadd.f32 %v907_v53, %v2086_v18  ;;  %v909_v30 = vpop.f32.mrb[93].mxu1 }
 0x2a8   :  { %v910_v39 = vadd.f32 %v909_v30, %v2090_v33  ;;  %1281 = vmatprep.mubr.f32.mxu0 %v1025_v9 }
 0x2a9   :  { %1282 = vmatmul.mubr.f32.gmra.mrb[90].mxu0 %v1024_v57  ;;  %v1026_v48 = vmax.f32 %v908_v54, 0.0 }
 0x2aa   :  { %v1027_v11 = vmax.f32 %v910_v39, 0.0  ;;  %v913_v60 = vpop.f32.mrb[94].mxu1 }
 0x2ab   :  { %v914_v27 = vadd.f32 %v913_v60, %v2086_v18  ;;  %v915_v36 = vpop.f32.mrb[95].mxu1 }
 0x2ac   :  { %v916_v56 = vadd.f32 %v915_v36, %v2090_v33  ;;  %1286 = vmatprep.mubr.f32.mxu0 %v1027_v11  ;;  %v2171_v11 = vld [vmem:[%s2232_s6] ss:$0 sm:$0xff]  ;;  %s1745_s6 = smov [#allocation10]  }
 0x2ad   :  { %1287 = vmatmul.mubr.f32.gmra.mrb[92].mxu0 %v1026_v48  ;;  %v1028_v61 = vmax.f32 %v914_v27, 0.0  ;;  %s1385_s30 = sshll.u32 %s1745_s6, 4  ;;  %s1386_s30 = int_to_ptr.vmem [resolvable:$true] %s1385_s30 }
 0x2ae   :  { %v1029_v1 = vmax.f32 %v916_v56, 0.0  ;;  %v919_v62 = vpop.f32.mrb[96].mxu1  ;;  %s1706_s8 = scalar_lea.vmem %s1386_s30, 4864  ;;  %p1711_p5 = scmp.lt.s32.totalorder %s1386_s30, %s1386_s30 }
 0x2af   :  { %v920_v0 = vadd.f32 %v919_v62, %v2086_v18  ;;  %v921_v25 = vpop.f32.mrb[97].mxu1  ;;  %p1707_p4 = scmp.ne.s32.totalorder %s1386_s30, %s1706_s8  ;;  %p1712_p6 = scmp.lt.s32.totalorder %s1706_s8, %s1706_s8 }
 0x2b0   :  { %v922_v47 = vadd.f32 %v921_v25, %v2090_v33  ;;  %1291 = vmatprep.mubr.f32.mxu0 %v1029_v1 }
 0x2b1   :  { %1292 = vmatmul.mubr.f32.gmra.mrb[94].mxu0 %v1028_v61  ;;  %v1030_v46 = vmax.f32 %v920_v0, 0.0  ;;  %p1713_p7 = por %p1712_p6, %p1711_p5 }
 0x2b2   :  { %v1031_v21 = vmax.f32 %v922_v47, 0.0  ;;  %v925_v4 = vpop.f32.mrb[98].mxu1 }
 0x2b3   :  { %v926_v35 = vadd.f32 %v925_v4, %v2086_v18  ;;  %v927_v6 = vpop.f32.mrb[99].mxu1  ;;  %p1714_p8 = pnand %p1713_p7, %p1707_p4 }
 0x2b4   :  { %v928_v49 = vadd.f32 %v927_v6, %v2090_v33  ;;  %1296 = vmatprep.mubr.f32.mxu0 %v1031_v21 }
 0x2b5   :  { %1297 = vmatmul.mubr.f32.gmra.mrb[96].mxu0 %v1030_v46  ;;  %v1032_v12 = vmax.f32 %v926_v35, 0.0 }
 0x2b6   :  { %v1033_v5 = vmax.f32 %v928_v49, 0.0  ;;  %v931_v55 = vpop.f32.mrb[100].mxu1 }
 0x2b7   :  { %v932_v43 = vadd.f32 %v931_v55, %v2086_v18  ;;  %v933_v17 = vpop.f32.mrb[101].mxu1 }
 0x2b8   :  { %v934_v63 = vadd.f32 %v933_v17, %v2090_v33  ;;  %1301 = vmatprep.mubr.f32.mxu0 %v1033_v5 }
 0x2b9   :  { %1302 = vmatmul.mubr.f32.gmra.mrb[98].mxu0 %v1032_v12  ;;  %v1034_v19 = vmax.f32 %v932_v43, 0.0 }
 0x2ba   :  { %v1035_v8 = vmax.f32 %v934_v63, 0.0  ;;  %v937_v10 = vpop.f32.mrb[102].mxu1 }
 0x2bb   :  { %v938_v2 = vadd.f32 %v937_v10, %v2086_v18  ;;  %v939_v24 = vpop.f32.mrb[103].mxu1 }
 0x2bc   :  { %v940_v51 = vadd.f32 %v939_v24, %v2090_v33  ;;  %1306 = vmatprep.mubr.f32.mxu0 %v1035_v8 }
 0x2bd   :  { %1307 = vmatmul.mubr.f32.gmra.mrb[100].mxu0 %v1034_v19  ;;  %v1036_v16 = vmax.f32 %v938_v2, 0.0 }
 0x2be   :  { %v1037_v14 = vmax.f32 %v940_v51, 0.0  ;;  %v943_v13 = vpop.f32.mrb[104].mxu1 }
 0x2bf   :  { %v944_v26 = vadd.f32 %v943_v13, %v2086_v18  ;;  %v945_v15 = vpop.f32.mrb[105].mxu1 }
 0x2c0   :  { %v946_v23 = vadd.f32 %v945_v15, %v2090_v33  ;;  %1311 = vmatprep.mubr.f32.mxu0 %v1037_v14 }
 0x2c1   :  { %1312 = vmatmul.mubr.f32.gmra.mrb[102].mxu0 %v1036_v16  ;;  %v1038_v37 = vmax.f32 %v944_v26, 0.0 }
 0x2c2   :  { %v1039_v59 = vmax.f32 %v946_v23, 0.0  ;;  %v949_v29 = vpop.f32.mrb[106].mxu1 }
 0x2c3   :  { %v950_v32 = vadd.f32 %v949_v29, %v2086_v18  ;;  %v951_v7 = vpop.f32.mrb[107].mxu1 }
 0x2c4   :  { %v952_v34 = vadd.f32 %v951_v7, %v2090_v33  ;;  %1316 = vmatprep.mubr.f32.mxu0 %v1039_v59 }
 0x2c5   :  { %1317 = vmatmul.mubr.f32.gmra.mrb[104].mxu0 %v1038_v37  ;;  %v1040_v28 = vmax.f32 %v950_v32, 0.0 }
 0x2c6   :  { %v1041_v52 = vmax.f32 %v952_v34, 0.0  ;;  %v955_v38 = vpop.f32.mrb[108].mxu1 }
 0x2c7   :  { %v956_v41 = vadd.f32 %v955_v38, %v2086_v18  ;;  %v957_v3 = vpop.f32.mrb[109].mxu1 }
 0x2c8   :  { %v958_v42 = vadd.f32 %v957_v3, %v2090_v33  ;;  %1321 = vmatprep.mubr.f32.mxu0 %v1041_v52 }
 0x2c9   :  { %1322 = vmatmul.mubr.f32.gmra.mrb[106].mxu0 %v1040_v28  ;;  %v1042_v22 = vmax.f32 %v956_v41, 0.0 }
 0x2ca   :  { %v1043_v44 = vmax.f32 %v958_v42, 0.0  ;;  %v961_v31 = vpop.f32.mrb[110].mxu1 }
 0x2cb   :  { %v962_v45 = vadd.f32 %v961_v31, %v2086_v18  ;;  %v963_v58 = vpop.f32.mrb[111].mxu1 }
 0x2cc   :  { %v964_v20 = vadd.f32 %v963_v58, %v2090_v33  ;;  %1326 = vmatprep.mubr.f32.mxu0 %v1043_v44 }
 0x2cd   :  { %1327 = vmatmul.mubr.f32.gmra.mrb[108].mxu0 %v1042_v22  ;;  %v1044_v9 = vmax.f32 %v962_v45, 0.0 }
 0x2ce   :  { %v1045_v40 = vmax.f32 %v964_v20, 0.0  ;;  %v967_v50 = vpop.f32.mrb[112].mxu1 }
 0x2cf   :  { %v968_v53 = vadd.f32 %v967_v50, %v2086_v18  ;;  %v969_v57 = vpop.f32.mrb[113].mxu1 }
 0x2d0   :  { %v970_v54 = vadd.f32 %v969_v57, %v2090_v33  ;;  %1331 = vmatprep.mubr.f32.mxu0 %v1045_v40 }
 0x2d1   :  { %1332 = vmatmul.mubr.f32.gmra.mrb[110].mxu0 %v1044_v9  ;;  %v1046_v39 = vmax.f32 %v968_v53, 0.0 }
 0x2d2   :  { %v1047_v30 = vmax.f32 %v970_v54, 0.0 }
 0x2d4   :  { %1336 = vmatprep.mubr.f32.mxu0 %v1047_v30 }
 0x2d5   :  { %1337 = vmatmul.mubr.f32.gmra.mrb[112].mxu0 %v1046_v39 }
 0x314   :  { %v1153_v60 = vpop.f32.mrb[38].mxu0 }
 0x315   :  { %v1154_v48 = vadd.f32 %v2171_v11, %v1153_v60  ;;  %v1155_v27 = vpop.f32.mrb[39].mxu0 }
 0x317   :  { %1342 = vst [vmem:[#allocation10] sm:$0xff] %v1154_v48 }
 0x318   :  { %v1158_v18 = vpop.f32.mrb[40].mxu0 }
 0x319   :  { %v1159_v36 = vadd.f32 %v2171_v11, %v1158_v18  ;;  %v1160_v33 = vpop.f32.mrb[41].mxu0 }
 0x31b   :  { %1343 = vst [vmem:[#allocation10 + $0x8] sm:$0xff] %v1159_v36 }
 0x31c   :  { %v1163_v56 = vpop.f32.mrb[42].mxu0 }
 0x31d   :  { %v1164_v1 = vadd.f32 %v2171_v11, %v1163_v56  ;;  %v1165_v62 = vpop.f32.mrb[43].mxu0 }
 0x31f   :  { %1344 = vst [vmem:[#allocation10 + $0x10] sm:$0xff] %v1164_v1 }
 0x320   :  { %v1168_v61 = vpop.f32.mrb[44].mxu0 }
 0x321   :  { %v1169_v0 = vadd.f32 %v2171_v11, %v1168_v61  ;;  %v1170_v25 = vpop.f32.mrb[45].mxu0 }
 0x323   :  { %1345 = vst [vmem:[#allocation10 + $0x18] sm:$0xff] %v1169_v0 }
 0x324   :  { %v1173_v47 = vpop.f32.mrb[46].mxu0 }
 0x325   :  { %v1174_v21 = vadd.f32 %v2171_v11, %v1173_v47  ;;  %v1175_v4 = vpop.f32.mrb[47].mxu0 }
 0x327   :  { %1346 = vst [vmem:[#allocation10 + $0x20] sm:$0xff] %v1174_v21 }
 0x328   :  { %v1178_v46 = vpop.f32.mrb[48].mxu0 }
 0x329   :  { %v1179_v35 = vadd.f32 %v2171_v11, %v1178_v46  ;;  %v1180_v6 = vpop.f32.mrb[49].mxu0 }
 0x32b   :  { %1347 = vst [vmem:[#allocation10 + $0x28] sm:$0xff] %v1179_v35 }
 0x32c   :  { %v1183_v49 = vpop.f32.mrb[50].mxu0 }
 0x32d   :  { %v1184_v5 = vadd.f32 %v2171_v11, %v1183_v49  ;;  %v1185_v55 = vpop.f32.mrb[51].mxu0 }
 0x32f   :  { %1348 = vst [vmem:[#allocation10 + $0x30] sm:$0xff] %v1184_v5 }
 0x330   :  { %v1188_v12 = vpop.f32.mrb[52].mxu0 }
 0x331   :  { %v1189_v43 = vadd.f32 %v2171_v11, %v1188_v12  ;;  %v1190_v17 = vpop.f32.mrb[53].mxu0 }
 0x333   :  { %1349 = vst [vmem:[#allocation10 + $0x38] sm:$0xff] %v1189_v43 }
 0x334   :  { %v1193_v63 = vpop.f32.mrb[54].mxu0 }
 0x335   :  { %v1194_v8 = vadd.f32 %v2171_v11, %v1193_v63  ;;  %v1195_v10 = vpop.f32.mrb[55].mxu0 }
 0x337   :  { %1350 = vst [vmem:[#allocation10 + $0x40] sm:$0xff] %v1194_v8 }
 0x338   :  { %v1198_v19 = vpop.f32.mrb[56].mxu0 }
 0x339   :  { %v1199_v2 = vadd.f32 %v2171_v11, %v1198_v19  ;;  %v1200_v24 = vpop.f32.mrb[57].mxu0 }
 0x33b   :  { %1351 = vst [vmem:[#allocation10 + $0x48] sm:$0xff] %v1199_v2 }
 0x33c   :  { %v1203_v51 = vpop.f32.mrb[58].mxu0 }
 0x33d   :  { %v1204_v14 = vadd.f32 %v2171_v11, %v1203_v51  ;;  %v1205_v13 = vpop.f32.mrb[59].mxu0 }
 0x33f   :  { %1352 = vst [vmem:[#allocation10 + $0x50] sm:$0xff] %v1204_v14 }
 0x340   :  { %v1208_v16 = vpop.f32.mrb[60].mxu0 }
 0x341   :  { %v1209_v26 = vadd.f32 %v2171_v11, %v1208_v16  ;;  %v1210_v15 = vpop.f32.mrb[61].mxu0 }
 0x343   :  { %1353 = vst [vmem:[#allocation10 + $0x58] sm:$0xff] %v1209_v26 }
 0x344   :  { %v1213_v23 = vpop.f32.mrb[62].mxu0 }
 0x345   :  { %v1214_v59 = vadd.f32 %v2171_v11, %v1213_v23  ;;  %v1215_v29 = vpop.f32.mrb[63].mxu0 }
 0x347   :  { %1354 = vst [vmem:[#allocation10 + $0x60] sm:$0xff] %v1214_v59 }
 0x348   :  { %v1218_v37 = vpop.f32.mrb[64].mxu0 }
 0x349   :  { %v1219_v32 = vadd.f32 %v2171_v11, %v1218_v37  ;;  %v1220_v7 = vpop.f32.mrb[65].mxu0 }
 0x34b   :  { %1355 = vst [vmem:[#allocation10 + $0x68] sm:$0xff] %v1219_v32 }
 0x34c   :  { %v1223_v34 = vpop.f32.mrb[66].mxu0 }
 0x34d   :  { %v1224_v52 = vadd.f32 %v2171_v11, %v1223_v34  ;;  %v1225_v38 = vpop.f32.mrb[67].mxu0 }
 0x34f   :  { %1356 = vst [vmem:[#allocation10 + $0x70] sm:$0xff] %v1224_v52 }
 0x350   :  { %v1228_v28 = vpop.f32.mrb[68].mxu0 }
 0x351   :  { %v1229_v41 = vadd.f32 %v2171_v11, %v1228_v28  ;;  %v1230_v3 = vpop.f32.mrb[69].mxu0 }
 0x353   :  { %1357 = vst [vmem:[#allocation10 + $0x78] sm:$0xff] %v1229_v41 }
 0x354   :  { %v1233_v42 = vpop.f32.mrb[70].mxu0 }
 0x355   :  { %v1234_v44 = vadd.f32 %v2171_v11, %v1233_v42  ;;  %v1235_v31 = vpop.f32.mrb[71].mxu0 }
 0x357   :  { %1358 = vst [vmem:[#allocation10 + $0x80] sm:$0xff] %v1234_v44 }
 0x358   :  { %v1238_v22 = vpop.f32.mrb[72].mxu0 }
 0x359   :  { %v1239_v45 = vadd.f32 %v2171_v11, %v1238_v22  ;;  %v1240_v58 = vpop.f32.mrb[73].mxu0 }
 0x35b   :  { %1359 = vst [vmem:[#allocation10 + $0x88] sm:$0xff] %v1239_v45 }
 0x35c   :  { %v1243_v20 = vpop.f32.mrb[74].mxu0 }
 0x35d   :  { %v1244_v40 = vadd.f32 %v2171_v11, %v1243_v20  ;;  %v1245_v50 = vpop.f32.mrb[75].mxu0 }
 0x35f   :  { %1360 = vst [vmem:[#allocation10 + $0x90] sm:$0xff] %v1244_v40 }
 0x360   :  { %v1248_v9 = vpop.f32.mrb[76].mxu0 }
 0x361   :  { %v1249_v53 = vadd.f32 %v2171_v11, %v1248_v9  ;;  %v1250_v57 = vpop.f32.mrb[77].mxu0 }
 0x363   :  { %1361 = vst [vmem:[#allocation10 + $0x98] sm:$0xff] %v1249_v53 }
 0x364   :  { %v1253_v54 = vpop.f32.mrb[78].mxu0 }
 0x365   :  { %v1254_v30 = vadd.f32 %v2171_v11, %v1253_v54  ;;  %v1255_v39 = vpop.f32.mrb[79].mxu0 }
 0x367   :  { %1362 = vst [vmem:[#allocation10 + $0xa0] sm:$0xff] %v1254_v30 }
 0x368   :  { %v1258_v60 = vpop.f32.mrb[80].mxu0 }
 0x369   :  { %v1259_v48 = vadd.f32 %v2171_v11, %v1258_v60  ;;  %v1260_v27 = vpop.f32.mrb[81].mxu0 }
 0x36b   :  { %1363 = vst [vmem:[#allocation10 + $0xa8] sm:$0xff] %v1259_v48 }
 0x36c   :  { %v1263_v18 = vpop.f32.mrb[82].mxu0 }
 0x36d   :  { %v1264_v36 = vadd.f32 %v2171_v11, %v1263_v18  ;;  %v1265_v33 = vpop.f32.mrb[83].mxu0 }
 0x36f   :  { %1364 = vst [vmem:[#allocation10 + $0xb0] sm:$0xff] %v1264_v36 }
 0x370   :  { %v1268_v56 = vpop.f32.mrb[84].mxu0 }
 0x371   :  { %v1269_v1 = vadd.f32 %v2171_v11, %v1268_v56  ;;  %v1270_v62 = vpop.f32.mrb[85].mxu0 }
 0x373   :  { %1365 = vst [vmem:[#allocation10 + $0xb8] sm:$0xff] %v1269_v1 }
 0x374   :  { %v1273_v61 = vpop.f32.mrb[86].mxu0 }
 0x375   :  { %v1274_v0 = vadd.f32 %v2171_v11, %v1273_v61  ;;  %v1275_v25 = vpop.f32.mrb[87].mxu0 }
 0x377   :  { %1366 = vst [vmem:[#allocation10 + $0xc0] sm:$0xff] %v1274_v0 }
 0x378   :  { %v1278_v47 = vpop.f32.mrb[88].mxu0 }
 0x379   :  { %v1279_v21 = vadd.f32 %v2171_v11, %v1278_v47  ;;  %v1280_v4 = vpop.f32.mrb[89].mxu0 }
 0x37b   :  { %1367 = vst [vmem:[#allocation10 + $0xc8] sm:$0xff] %v1279_v21 }
 0x37c   :  { %v1283_v46 = vpop.f32.mrb[90].mxu0 }
 0x37d   :  { %v1284_v35 = vadd.f32 %v2171_v11, %v1283_v46  ;;  %v1285_v6 = vpop.f32.mrb[91].mxu0 }
 0x37f   :  { %1368 = vst [vmem:[#allocation10 + $0xd0] sm:$0xff] %v1284_v35 }
 0x380   :  { %v1288_v49 = vpop.f32.mrb[92].mxu0 }
 0x381   :  { %v1289_v5 = vadd.f32 %v2171_v11, %v1288_v49  ;;  %v1290_v55 = vpop.f32.mrb[93].mxu0 }
 0x383   :  { %1369 = vst [vmem:[#allocation10 + $0xd8] sm:$0xff] %v1289_v5 }
 0x384   :  { %v1293_v12 = vpop.f32.mrb[94].mxu0 }
 0x385   :  { %v1294_v43 = vadd.f32 %v2171_v11, %v1293_v12  ;;  %v1295_v17 = vpop.f32.mrb[95].mxu0 }
 0x387   :  { %1370 = vst [vmem:[#allocation10 + $0xe0] sm:$0xff] %v1294_v43 }
 0x388   :  { %v1298_v63 = vpop.f32.mrb[96].mxu0 }
 0x389   :  { %v1299_v8 = vadd.f32 %v2171_v11, %v1298_v63  ;;  %v1300_v10 = vpop.f32.mrb[97].mxu0 }
 0x38b   :  { %1371 = vst [vmem:[#allocation10 + $0xe8] sm:$0xff] %v1299_v8 }
 0x38c   :  { %v1303_v19 = vpop.f32.mrb[98].mxu0 }
 0x38d   :  { %v1304_v2 = vadd.f32 %v2171_v11, %v1303_v19  ;;  %v1305_v24 = vpop.f32.mrb[99].mxu0 }
 0x38f   :  { %1372 = vst [vmem:[#allocation10 + $0xf0] sm:$0xff] %v1304_v2 }
 0x390   :  { %v1308_v51 = vpop.f32.mrb[100].mxu0 }
 0x391   :  { %v1309_v14 = vadd.f32 %v2171_v11, %v1308_v51  ;;  %v1310_v13 = vpop.f32.mrb[101].mxu0 }
 0x393   :  { %1373 = vst [vmem:[#allocation10 + $0xf8] sm:$0xff] %v1309_v14 }
 0x394   :  { %v1313_v16 = vpop.f32.mrb[102].mxu0 }
 0x395   :  { %v1314_v26 = vadd.f32 %v2171_v11, %v1313_v16  ;;  %v1315_v15 = vpop.f32.mrb[103].mxu0 }
 0x397   :  { %1374 = vst [vmem:[#allocation10 + $0x100] sm:$0xff] %v1314_v26 }
 0x398   :  { %v1318_v23 = vpop.f32.mrb[104].mxu0 }
 0x399   :  { %v1319_v59 = vadd.f32 %v2171_v11, %v1318_v23  ;;  %v1320_v29 = vpop.f32.mrb[105].mxu0 }
 0x39b   :  { %1375 = vst [vmem:[#allocation10 + $0x108] sm:$0xff] %v1319_v59 }
 0x39c   :  { %v1323_v37 = vpop.f32.mrb[106].mxu0 }
 0x39d   :  { %v1324_v32 = vadd.f32 %v2171_v11, %v1323_v37  ;;  %v1325_v7 = vpop.f32.mrb[107].mxu0 }
 0x39f   :  { %1376 = vst [vmem:[#allocation10 + $0x110] sm:$0xff] %v1324_v32 }
 0x3a0   :  { %v1328_v34 = vpop.f32.mrb[108].mxu0 }
 0x3a1   :  { %v1329_v52 = vadd.f32 %v2171_v11, %v1328_v34  ;;  %v1330_v38 = vpop.f32.mrb[109].mxu0 }
 0x3a3   :  { %1377 = vst [vmem:[#allocation10 + $0x118] sm:$0xff] %v1329_v52 }
 0x3a4   :  { %v1333_v28 = vpop.f32.mrb[110].mxu0 }
 0x3a5   :  { %v1334_v41 = vadd.f32 %v2171_v11, %v1333_v28  ;;  %v1335_v3 = vpop.f32.mrb[111].mxu0 }
 0x3a7   :  { %1378 = vst [vmem:[#allocation10 + $0x120] sm:$0xff] %v1334_v41 }
 0x3a8   :  { %v1338_v42 = vpop.f32.mrb[112].mxu0 }
 0x3a9   :  { %v1339_v44 = vadd.f32 %v2171_v11, %v1338_v42  ;;  %v1340_v31 = vpop.f32.mrb[113].mxu0 }
 0x3ab   :  { %1379 = vst [vmem:[#allocation10 + $0x128] sm:$0xff] %v1339_v44 }
 0x3ac   :  { %1717 = shalt.err (!%p1714_p8)
}
 0x3ad   :  { %s1718_s11 = scalar_lea.hbm %s2233_s7, 4864 }
 0x3ae   :  { %p1719_p9 = scmp.ne.s32.totalorder %s2233_s7, %s1718_s11  ;;  %p1722_p10 = scmp.lt.u32.totalorder %s1718_s11, %s2233_s7 }
 0x3b0   :  { %p1724_p11 = pnand %p1722_p10, %p1719_p9 }
 0x3b2   :  { %1727 = shalt.err (!%p1724_p11)
}
 0x3b3   :  { %1391 = dma.vmem_to_hbm [thread:$0]  %s1386_s30, 4864, %s2233_s7, [#allocation4], %s1742_s3, %s1742_s3, %s1743_s13  }
 0x3b4   :  { %1734 = dma.done.wait [#allocation4], 4864  }
 0x3b5   :  { %1735 = vsyncadd [#allocation4], 4294962432 }
 0x3b6   :  { %1395 = vsyncpa [#allocation3], 1 }
 0x3b7   :  { %1396 = vsyncpa [#allocation6], 1 }
 0x3b8   :  { %1397 = vsyncpa [#allocation9], 1 }
 0x3b9   :  { %1398 = vsyncpa [#allocation4], 1 }

</bundles_post_ra>
